<compile_context>
chip_gen: v7x
topology: tpu7x:2x2x1
jax: 0.10.0
libtpu: 0.0.40
codegen_flags: <defaults>
</compile_context>

<pallas_src>
import functools
import math

import jax
import jax.numpy as jnp
from jax.experimental import pallas as pl
from jax.experimental.pallas import tpu as pltpu

# ----- config: structural clone of bert-base-uncased, scaled down -----
VOCAB = 100
HIDDEN = 32
N_LAYERS = 2
N_HEADS = 4
HEAD_DIM = HIDDEN // N_HEADS
INTER = 64
MAX_POS = 16
NUM_LABELS = 9
LN_EPS = 1e-12
CLS_PAD = 128            # pad classifier lane dim to one full vreg lane width


# ---------------- in-kernel helpers (traced inside the Pallas body) --------
def _layernorm(h, g, b):
    mean = jnp.mean(h, axis=-1, keepdims=True)
    var = jnp.mean(jnp.square(h - mean), axis=-1, keepdims=True)
    return (h - mean) * jax.lax.rsqrt(var + LN_EPS) * g + b


def _mm(x, w):
    # bf16 MXU inputs, f32 accumulation
    return jnp.dot(x.astype(jnp.bfloat16), w, preferred_element_type=jnp.float32)


def _gelu(y):
    # tanh-approx GELU (HF bert-base uses exact erf GELU; diff < 1e-3)
    c = math.sqrt(2.0 / math.pi)
    return 0.5 * y * (1.0 + jnp.tanh(c * (y + 0.044715 * y * y * y)))


# ---------------- the single fused Pallas kernel ----------------------------
def _bert_kernel(h0_ref, labels_ref,
                 emb_g_ref, emb_b_ref,
                 wqkv_ref, bqkv_ref, wo_ref, bo_ref, ln1g_ref, ln1b_ref,
                 wi_ref, bi_ref, wout_ref, bout_ref, ln2g_ref, ln2b_ref,
                 pool_w_ref, pool_b_ref, cls_w_ref, cls_b_ref,
                 logits_ref, loss_ref,
                 *, batch, seq):
    scale = 1.0 / math.sqrt(HEAD_DIM)

    # ---- embedding layernorm ----
    h = _layernorm(h0_ref[...], emb_g_ref[...], emb_b_ref[...])   # (B*S, H) f32

    # ---- transformer encoder layers (fully unrolled, VMEM-resident) ----
    for l in range(N_LAYERS):
        # fused QKV projection: one (H, 3H) matmul instead of three (H, H)
        qkv = _mm(h, wqkv_ref[l]) + bqkv_ref[l]                    # (B*S, 3H) f32
        qkv3 = qkv.reshape(batch, seq, 3 * HIDDEN)                 # (B, S, 3H)

        # hoisted bf16 casts: one per q/k/v per layer (was per-(b,h) slice)
        q_all = qkv3[:, :, 0 * HIDDEN:1 * HIDDEN].astype(jnp.bfloat16)  # (B,S,H)
        k_all = qkv3[:, :, 1 * HIDDEN:2 * HIDDEN].astype(jnp.bfloat16)
        v_all = qkv3[:, :, 2 * HIDDEN:3 * HIDDEN].astype(jnp.bfloat16)

        # multi-head self-attention, all-ones mask; one batched contraction
        # per head (covers all batches), everything stays as values -- no
        # scratch, no masked scatter stores, no per-slice casts.
        ctx_heads = []
        for hh in range(N_HEADS):
            c0, c1 = hh * HEAD_DIM, (hh + 1) * HEAD_DIM
            q_h = q_all[:, :, c0:c1]                               # (B, S, D) bf16
            k_h = k_all[:, :, c0:c1]
            v_h = v_all[:, :, c0:c1]
            s = jnp.einsum("bqd,bkd->bqk", q_h, k_h,
                           preferred_element_type=jnp.float32) * scale  # (B,S,S)
            m = jnp.max(s, axis=-1, keepdims=True)
            p = jnp.exp(s - m)
            p = p * pl.reciprocal(jnp.sum(p, axis=-1, keepdims=True),
                                  approx=True)
            ctx_heads.append(
                jnp.einsum("bqk,bkd->bqd", p.astype(jnp.bfloat16), v_h,
                           preferred_element_type=jnp.float32))    # (B, S, D)
        ctx = jnp.concatenate(ctx_heads, axis=-1).reshape(batch * seq, HIDDEN)

        # output projection + residual + LayerNorm (fused, no HBM round-trip)
        attn_out = _mm(ctx, wo_ref[l]) + bo_ref[l]
        h = _layernorm(attn_out + h, ln1g_ref[l], ln1b_ref[l])

        # FFN: intermediate + GELU + output projection + residual + LayerNorm
        inter = _gelu(_mm(h, wi_ref[l]) + bi_ref[l])               # f32 math
        ffn_out = _mm(inter, wout_ref[l]) + bout_ref[l]
        h = _layernorm(ffn_out + h, ln2g_ref[l], ln2b_ref[l])

    # ---- pooler: CLS token (position 0) of each sequence as a value slice ----
    cls_tokens = h.reshape(batch, seq, HIDDEN)[:, 0, :]            # (B, H) f32
    pooled = jnp.tanh(_mm(cls_tokens, pool_w_ref[...]) + pool_b_ref[...])

    # ---- classifier into a lane-dense 128-wide padded buffer ----
    # padded columns carry a -1e9 bias, so CE below ignores them.
    logits = _mm(pooled, cls_w_ref[...]) + cls_b_ref[...]          # (B, 128)
    logits_ref[...] = logits

    # ---- softmax cross-entropy (mean over batch); labels read from SMEM ----
    m = jnp.max(logits, axis=-1, keepdims=True)
    e = jnp.exp(logits - m)
    lse = jnp.log(jnp.sum(e, axis=-1, keepdims=True)) + m          # (B, 1)
    lbl = jnp.concatenate(
        [jnp.full((1, 1), labels_ref[b], dtype=jnp.int32) for b in range(batch)],
        axis=0)                                                    # (B, 1)
    cls_idx = jax.lax.broadcasted_iota(jnp.int32, (batch, CLS_PAD), 1)
    onehot = (cls_idx == lbl).astype(jnp.float32)                  # (B, 128)
    loss_ref[0, 0] = jnp.sum(onehot * (lse - logits)) / batch


# ---------------- parameter init (deterministic, synthetic) ----------------
def init_params(key):
    keys = iter(jax.random.split(key, 256))

    def w(shape, scale=0.02):
        return (scale * jax.random.normal(next(keys), shape)).astype(jnp.float32)

    params = {
        "word_emb": w((VOCAB, HIDDEN)),
        "pos_emb": w((MAX_POS, HIDDEN)),
        "type_emb": w((2, HIDDEN)),
        "emb_ln_g": jnp.ones((HIDDEN,), jnp.float32),
        "emb_ln_b": jnp.zeros((HIDDEN,), jnp.float32),
        "pool_w": w((HIDDEN, HIDDEN)),
        "pool_b": jnp.zeros((HIDDEN,), jnp.float32),
        "cls_w": w((HIDDEN, NUM_LABELS)),
        "cls_b": jnp.zeros((NUM_LABELS,), jnp.float32),
        "layers": [],
    }
    for _ in range(N_LAYERS):
        params["layers"].append({
            "wq": w((HIDDEN, HIDDEN)), "bq": jnp.zeros((HIDDEN,), jnp.float32),
            "wk": w((HIDDEN, HIDDEN)), "bk": jnp.zeros((HIDDEN,), jnp.float32),
            "wv": w((HIDDEN, HIDDEN)), "bv": jnp.zeros((HIDDEN,), jnp.float32),
            "wo": w((HIDDEN, HIDDEN)), "bo": jnp.zeros((HIDDEN,), jnp.float32),
            "ln1_g": jnp.ones((HIDDEN,), jnp.float32),
            "ln1_b": jnp.zeros((HIDDEN,), jnp.float32),
            "wi": w((HIDDEN, INTER)), "bi": jnp.zeros((INTER,), jnp.float32),
            "wout": w((INTER, HIDDEN)), "bout": jnp.zeros((HIDDEN,), jnp.float32),
            "ln2_g": jnp.ones((HIDDEN,), jnp.float32),
            "ln2_b": jnp.zeros((HIDDEN,), jnp.float32),
        })
    return params


# ---------------- weight packing (fused QKV, bf16 MXU weights, padding) -----
def _pack_params(params):
    L = params["layers"]
    bf16 = jnp.bfloat16
    return {
        "emb_g": params["emb_ln_g"].reshape(1, HIDDEN),
        "emb_b": params["emb_ln_b"].reshape(1, HIDDEN),
        "wqkv": jnp.stack([jnp.concatenate([l["wq"], l["wk"], l["wv"]], axis=1)
                           for l in L]).astype(bf16),                 # (NL, H, 3H)
        "bqkv": jnp.stack([jnp.concatenate([l["bq"], l["bk"], l["bv"]])[None, :]
                           for l in L]),                               # (NL, 1, 3H)
        "wo": jnp.stack([l["wo"] for l in L]).astype(bf16),
        "bo": jnp.stack([l["bo"][None, :] for l in L]),
        "ln1_g": jnp.stack([l["ln1_g"][None, :] for l in L]),
        "ln1_b": jnp.stack([l["ln1_b"][None, :] for l in L]),
        "wi": jnp.stack([l["wi"] for l in L]).astype(bf16),
        "bi": jnp.stack([l["bi"][None, :] for l in L]),
        "wout": jnp.stack([l["wout"] for l in L]).astype(bf16),
        "bout": jnp.stack([l["bout"][None, :] for l in L]),
        "ln2_g": jnp.stack([l["ln2_g"][None, :] for l in L]),
        "ln2_b": jnp.stack([l["ln2_b"][None, :] for l in L]),
        "pool_w": params["pool_w"].astype(bf16),
        "pool_b": params["pool_b"].reshape(1, HIDDEN),
        "cls_w": jnp.zeros((HIDDEN, CLS_PAD), jnp.float32)
                   .at[:, :NUM_LABELS].set(params["cls_w"]).astype(bf16),
        # padded classifier columns get a huge negative bias -> ignored by CE
        "cls_b": jnp.full((1, CLS_PAD), -1e9, jnp.float32)
                   .at[0, :NUM_LABELS].set(params["cls_b"]),
    }


# ---------------- forward: embedding gather in JAX, everything else fused ---
def bert_forward(params, text, label):
    B, S = text.shape
    BS = B * S
    pk = _pack_params(params)

    # embeddings: word + position + token_type(0); dropout is identity (eval)
    # TODO(synk): embedding table gather stays at the JAX level (tiny vocab).
    h0 = (params["word_emb"][text]
          + params["pos_emb"][jnp.arange(S)][None, :, :]
          + params["type_emb"][0][None, None, :]).reshape(BS, HIDDEN)
    h0 = h0.astype(jnp.float32)
    labels = label.reshape(B).astype(jnp.int32)

    vmem = pl.BlockSpec(memory_space=pltpu.MemorySpace.VMEM)
    smem = pl.BlockSpec(memory_space=pltpu.MemorySpace.SMEM)

    kernel = functools.partial(_bert_kernel, batch=B, seq=S)
    logits_pad, loss = pl.pallas_call(
        kernel,
        out_shape=(jax.ShapeDtypeStruct((B, CLS_PAD), jnp.float32),
                   jax.ShapeDtypeStruct((1, 1), jnp.float32)),
        in_specs=[vmem, smem] + [vmem] * 18,   # h0 + weights in VMEM, labels in SMEM
        out_specs=(vmem, smem),                # logits in VMEM, scalar loss in SMEM
    )(h0, labels,
      pk["emb_g"], pk["emb_b"],
      pk["wqkv"], pk["bqkv"], pk["wo"], pk["bo"], pk["ln1_g"], pk["ln1_b"],
      pk["wi"], pk["bi"], pk["wout"], pk["bout"], pk["ln2_g"], pk["ln2_b"],
      pk["pool_w"], pk["pool_b"], pk["cls_w"], pk["cls_b"])

    return loss[0, 0], logits_pad[:, :NUM_LABELS]


if __name__ == "__main__":
    key = jax.random.PRNGKey(0)
    k_param, k_text, k_label = jax.random.split(key, 3)

    params = init_params(k_param)
    B, S = 2, 8
    text = jax.random.randint(k_text, (B, S), 0, VOCAB, dtype=jnp.int32)
    label = jax.random.randint(k_label, (B,), 0, NUM_LABELS, dtype=jnp.int32)

    loss, logits = jax.jit(bert_forward)(params, text, label)
    jax.block_until_ready((loss, logits))
    assert logits.shape == (B, NUM_LABELS) and loss.shape == ()
    print("KERNEL_OK")
</pallas_src>

<mosaic_0001>
module attributes {stable_mosaic.version = 11 : i64} {
  func.func @_bert_kernel(%arg0: memref<16x32xf32, #tpu.memory_space<vmem>>, %arg1: memref<2xi32, #tpu.memory_space<smem>>, %arg2: memref<1x32xf32, #tpu.memory_space<vmem>>, %arg3: memref<1x32xf32, #tpu.memory_space<vmem>>, %arg4: memref<2x32x96xbf16, #tpu.memory_space<vmem>>, %arg5: memref<2x1x96xf32, #tpu.memory_space<vmem>>, %arg6: memref<2x32x32xbf16, #tpu.memory_space<vmem>>, %arg7: memref<2x1x32xf32, #tpu.memory_space<vmem>>, %arg8: memref<2x1x32xf32, #tpu.memory_space<vmem>>, %arg9: memref<2x1x32xf32, #tpu.memory_space<vmem>>, %arg10: memref<2x32x64xbf16, #tpu.memory_space<vmem>>, %arg11: memref<2x1x64xf32, #tpu.memory_space<vmem>>, %arg12: memref<2x64x32xbf16, #tpu.memory_space<vmem>>, %arg13: memref<2x1x32xf32, #tpu.memory_space<vmem>>, %arg14: memref<2x1x32xf32, #tpu.memory_space<vmem>>, %arg15: memref<2x1x32xf32, #tpu.memory_space<vmem>>, %arg16: memref<32x32xbf16, #tpu.memory_space<vmem>>, %arg17: memref<1x32xf32, #tpu.memory_space<vmem>>, %arg18: memref<32x128xbf16, #tpu.memory_space<vmem>>, %arg19: memref<1x128xf32, #tpu.memory_space<vmem>>, %arg20: memref<2x128xf32, #tpu.memory_space<vmem>>, %arg21: memref<1x1xf32, #tpu.memory_space<smem>>) attributes {dimension_semantics = [], scalar_prefetch = 0 : i64, scratch_operands = 0 : i64, tpu.core_type = #tpu.core_type<tc>} {
    %c0 = arith.constant 0 : index
    %c0_0 = arith.constant 0 : index
    %0 = vector.load %arg0[%c0, %c0_0] : memref<16x32xf32, #tpu.memory_space<vmem>>, vector<16x32xf32>
    %c0_1 = arith.constant 0 : index
    %c0_2 = arith.constant 0 : index
    %1 = vector.load %arg2[%c0_1, %c0_2] : memref<1x32xf32, #tpu.memory_space<vmem>>, vector<1x32xf32>
    %c0_3 = arith.constant 0 : index
    %c0_4 = arith.constant 0 : index
    %2 = vector.load %arg3[%c0_3, %c0_4] : memref<1x32xf32, #tpu.memory_space<vmem>>, vector<1x32xf32>
    %cst = arith.constant dense<0.000000e+00> : vector<16xf32>
    %3 = vector.multi_reduction <add>, %0, %cst [1] : vector<16x32xf32> to vector<16xf32>
    %4 = vector.shape_cast %3 : vector<16xf32> to vector<16x1xf32>
    %cst_5 = arith.constant 3.200000e+01 : f32
    %5 = vector.broadcast %cst_5 : f32 to vector<16x1xf32>
    %6 = arith.divf %4, %5 : vector<16x1xf32>
    %7 = vector.broadcast %6 : vector<16x1xf32> to vector<16x32xf32>
    %8 = arith.subf %0, %7 : vector<16x32xf32>
    %9 = arith.mulf %8, %8 : vector<16x32xf32>
    %cst_6 = arith.constant dense<0.000000e+00> : vector<16xf32>
    %10 = vector.multi_reduction <add>, %9, %cst_6 [1] : vector<16x32xf32> to vector<16xf32>
    %11 = vector.shape_cast %10 : vector<16xf32> to vector<16x1xf32>
    %cst_7 = arith.constant 3.200000e+01 : f32
    %12 = vector.broadcast %cst_7 : f32 to vector<16x1xf32>
    %13 = arith.divf %11, %12 : vector<16x1xf32>
    %14 = vector.broadcast %6 : vector<16x1xf32> to vector<16x32xf32>
    %15 = arith.subf %0, %14 : vector<16x32xf32>
    %cst_8 = arith.constant 9.99999996E-13 : f32
    %16 = vector.broadcast %cst_8 : f32 to vector<16x1xf32>
    %17 = arith.addf %13, %16 : vector<16x1xf32>
    %18 = math.rsqrt %17 : vector<16x1xf32>
    %19 = vector.broadcast %18 : vector<16x1xf32> to vector<16x32xf32>
    %20 = arith.mulf %15, %19 : vector<16x32xf32>
    %21 = vector.broadcast %1 : vector<1x32xf32> to vector<16x32xf32>
    %22 = arith.mulf %20, %21 : vector<16x32xf32>
    %23 = vector.broadcast %2 : vector<1x32xf32> to vector<16x32xf32>
    %24 = arith.addf %22, %23 : vector<16x32xf32>
    %c0_9 = arith.constant 0 : index
    %c0_10 = arith.constant 0 : index
    %c0_11 = arith.constant 0 : index
    %25 = vector.load %arg4[%c0_9, %c0_10, %c0_11] : memref<2x32x96xbf16, #tpu.memory_space<vmem>>, vector<1x32x96xbf16>
    %26 = vector.shape_cast %25 : vector<1x32x96xbf16> to vector<32x96xbf16>
    %27 = arith.truncf %24 : vector<16x32xf32> to vector<16x32xbf16>
    %cst_12 = arith.constant dense<0.000000e+00> : vector<16x96xf32>
    %28 = tpu.matmul %27, %26, %cst_12 {dimension_numbers = #tpu.dot_dimension_numbers<[1], [0], [0], [1], [0, 0, 1, 1], [], []>} : vector<16x32xbf16>, vector<32x96xbf16>, vector<16x96xf32> -> vector<16x96xf32>
    %c0_13 = arith.constant 0 : index
    %c0_14 = arith.constant 0 : index
    %c0_15 = arith.constant 0 : index
    %29 = vector.load %arg5[%c0_13, %c0_14, %c0_15] : memref<2x1x96xf32, #tpu.memory_space<vmem>>, vector<1x1x96xf32>
    %30 = vector.shape_cast %29 : vector<1x1x96xf32> to vector<1x96xf32>
    %31 = vector.broadcast %30 : vector<1x96xf32> to vector<16x96xf32>
    %32 = arith.addf %28, %31 : vector<16x96xf32>
    %33 = vector.shape_cast %32 : vector<16x96xf32> to vector<2x8x96xf32>
    %34 = vector.extract_strided_slice %33 {offsets = [0, 0, 0], sizes = [2, 8, 32], strides = [1, 1, 1]} : vector<2x8x96xf32> to vector<2x8x32xf32>
    %35 = arith.truncf %34 : vector<2x8x32xf32> to vector<2x8x32xbf16>
    %36 = vector.extract_strided_slice %33 {offsets = [0, 0, 32], sizes = [2, 8, 32], strides = [1, 1, 1]} : vector<2x8x96xf32> to vector<2x8x32xf32>
    %37 = arith.truncf %36 : vector<2x8x32xf32> to vector<2x8x32xbf16>
    %38 = vector.extract_strided_slice %33 {offsets = [0, 0, 64], sizes = [2, 8, 32], strides = [1, 1, 1]} : vector<2x8x96xf32> to vector<2x8x32xf32>
    %39 = arith.truncf %38 : vector<2x8x32xf32> to vector<2x8x32xbf16>
    %40 = vector.extract_strided_slice %35 {offsets = [0, 0, 0], sizes = [2, 8, 8], strides = [1, 1, 1]} : vector<2x8x32xbf16> to vector<2x8x8xbf16>
    %41 = vector.extract_strided_slice %37 {offsets = [0, 0, 0], sizes = [2, 8, 8], strides = [1, 1, 1]} : vector<2x8x32xbf16> to vector<2x8x8xbf16>
    %42 = vector.extract_strided_slice %39 {offsets = [0, 0, 0], sizes = [2, 8, 8], strides = [1, 1, 1]} : vector<2x8x32xbf16> to vector<2x8x8xbf16>
    "tpu.trace_start"() <{level = 10 : i32, message = "bqd,bkd->bqk"}> : () -> ()
    %cst_16 = arith.constant dense<0.000000e+00> : vector<2x8x8xf32>
    %43 = tpu.matmul %40, %41, %cst_16 {dimension_numbers = #tpu.dot_dimension_numbers<[2], [2], [1], [1], [0, 0, 0, 1, 1, 1], [0], [0]>} : vector<2x8x8xbf16>, vector<2x8x8xbf16>, vector<2x8x8xf32> -> vector<2x8x8xf32>
    "tpu.trace_stop"() : () -> ()
    %cst_17 = arith.constant 0.353553385 : f32
    %44 = vector.broadcast %cst_17 : f32 to vector<2x8x8xf32>
    %45 = arith.mulf %43, %44 : vector<2x8x8xf32>
    %cst_18 = arith.constant dense<0xFF800000> : vector<2x8xf32>
    %46 = vector.multi_reduction <maximumf>, %45, %cst_18 [2] : vector<2x8x8xf32> to vector<2x8xf32>
    %47 = vector.shape_cast %46 : vector<2x8xf32> to vector<2x8x1xf32>
    %48 = vector.broadcast %47 : vector<2x8x1xf32> to vector<2x8x8xf32>
    %49 = arith.subf %45, %48 : vector<2x8x8xf32>
    %50 = math.exp %49 : vector<2x8x8xf32>
    %cst_19 = arith.constant dense<0.000000e+00> : vector<2x8xf32>
    %51 = vector.multi_reduction <add>, %50, %cst_19 [2] : vector<2x8x8xf32> to vector<2x8xf32>
    %52 = vector.shape_cast %51 : vector<2x8xf32> to vector<2x8x1xf32>
    %53 = tpu.reciprocal %52 {approx = true} : vector<2x8x1xf32> -> vector<2x8x1xf32>
    %54 = vector.broadcast %53 : vector<2x8x1xf32> to vector<2x8x8xf32>
    %55 = arith.mulf %50, %54 : vector<2x8x8xf32>
    %56 = arith.truncf %55 : vector<2x8x8xf32> to vector<2x8x8xbf16>
    "tpu.trace_start"() <{level = 10 : i32, message = "bqk,bkd->bqd"}> : () -> ()
    %cst_20 = arith.constant dense<0.000000e+00> : vector<2x8x8xf32>
    %57 = tpu.matmul %56, %42, %cst_20 {dimension_numbers = #tpu.dot_dimension_numbers<[2], [1], [1], [2], [0, 0, 0, 1, 1, 2], [0], [0]>} : vector<2x8x8xbf16>, vector<2x8x8xbf16>, vector<2x8x8xf32> -> vector<2x8x8xf32>
    "tpu.trace_stop"() : () -> ()
    %58 = vector.extract_strided_slice %35 {offsets = [0, 0, 8], sizes = [2, 8, 8], strides = [1, 1, 1]} : vector<2x8x32xbf16> to vector<2x8x8xbf16>
    %59 = vector.extract_strided_slice %37 {offsets = [0, 0, 8], sizes = [2, 8, 8], strides = [1, 1, 1]} : vector<2x8x32xbf16> to vector<2x8x8xbf16>
    %60 = vector.extract_strided_slice %39 {offsets = [0, 0, 8], sizes = [2, 8, 8], strides = [1, 1, 1]} : vector<2x8x32xbf16> to vector<2x8x8xbf16>
    "tpu.trace_start"() <{level = 10 : i32, message = "bqd,bkd->bqk"}> : () -> ()
    %cst_21 = arith.constant dense<0.000000e+00> : vector<2x8x8xf32>
    %61 = tpu.matmul %58, %59, %cst_21 {dimension_numbers = #tpu.dot_dimension_numbers<[2], [2], [1], [1], [0, 0, 0, 1, 1, 1], [0], [0]>} : vector<2x8x8xbf16>, vector<2x8x8xbf16>, vector<2x8x8xf32> -> vector<2x8x8xf32>
    "tpu.trace_stop"() : () -> ()
    %cst_22 = arith.constant 0.353553385 : f32
    %62 = vector.broadcast %cst_22 : f32 to vector<2x8x8xf32>
    %63 = arith.mulf %61, %62 : vector<2x8x8xf32>
    %cst_23 = arith.constant dense<0xFF800000> : vector<2x8xf32>
    %64 = vector.multi_reduction <maximumf>, %63, %cst_23 [2] : vector<2x8x8xf32> to vector<2x8xf32>
    %65 = vector.shape_cast %64 : vector<2x8xf32> to vector<2x8x1xf32>
    %66 = vector.broadcast %65 : vector<2x8x1xf32> to vector<2x8x8xf32>
    %67 = arith.subf %63, %66 : vector<2x8x8xf32>
    %68 = math.exp %67 : vector<2x8x8xf32>
    %cst_24 = arith.constant dense<0.000000e+00> : vector<2x8xf32>
    %69 = vector.multi_reduction <add>, %68, %cst_24 [2] : vector<2x8x8xf32> to vector<2x8xf32>
    %70 = vector.shape_cast %69 : vector<2x8xf32> to vector<2x8x1xf32>
    %71 = tpu.reciprocal %70 {approx = true} : vector<2x8x1xf32> -> vector<2x8x1xf32>
    %72 = vector.broadcast %71 : vector<2x8x1xf32> to vector<2x8x8xf32>
    %73 = arith.mulf %68, %72 : vector<2x8x8xf32>
    %74 = arith.truncf %73 : vector<2x8x8xf32> to vector<2x8x8xbf16>
    "tpu.trace_start"() <{level = 10 : i32, message = "bqk,bkd->bqd"}> : () -> ()
    %cst_25 = arith.constant dense<0.000000e+00> : vector<2x8x8xf32>
    %75 = tpu.matmul %74, %60, %cst_25 {dimension_numbers = #tpu.dot_dimension_numbers<[2], [1], [1], [2], [0, 0, 0, 1, 1, 2], [0], [0]>} : vector<2x8x8xbf16>, vector<2x8x8xbf16>, vector<2x8x8xf32> -> vector<2x8x8xf32>
    "tpu.trace_stop"() : () -> ()
    %76 = vector.extract_strided_slice %35 {offsets = [0, 0, 16], sizes = [2, 8, 8], strides = [1, 1, 1]} : vector<2x8x32xbf16> to vector<2x8x8xbf16>
    %77 = vector.extract_strided_slice %37 {offsets = [0, 0, 16], sizes = [2, 8, 8], strides = [1, 1, 1]} : vector<2x8x32xbf16> to vector<2x8x8xbf16>
    %78 = vector.extract_strided_slice %39 {offsets = [0, 0, 16], sizes = [2, 8, 8], strides = [1, 1, 1]} : vector<2x8x32xbf16> to vector<2x8x8xbf16>
    "tpu.trace_start"() <{level = 10 : i32, message = "bqd,bkd->bqk"}> : () -> ()
    %cst_26 = arith.constant dense<0.000000e+00> : vector<2x8x8xf32>
    %79 = tpu.matmul %76, %77, %cst_26 {dimension_numbers = #tpu.dot_dimension_numbers<[2], [2], [1], [1], [0, 0, 0, 1, 1, 1], [0], [0]>} : vector<2x8x8xbf16>, vector<2x8x8xbf16>, vector<2x8x8xf32> -> vector<2x8x8xf32>
    "tpu.trace_stop"() : () -> ()
    %cst_27 = arith.constant 0.353553385 : f32
    %80 = vector.broadcast %cst_27 : f32 to vector<2x8x8xf32>
    %81 = arith.mulf %79, %80 : vector<2x8x8xf32>
    %cst_28 = arith.constant dense<0xFF800000> : vector<2x8xf32>
    %82 = vector.multi_reduction <maximumf>, %81, %cst_28 [2] : vector<2x8x8xf32> to vector<2x8xf32>
    %83 = vector.shape_cast %82 : vector<2x8xf32> to vector<2x8x1xf32>
    %84 = vector.broadcast %83 : vector<2x8x1xf32> to vector<2x8x8xf32>
    %85 = arith.subf %81, %84 : vector<2x8x8xf32>
    %86 = math.exp %85 : vector<2x8x8xf32>
    %cst_29 = arith.constant dense<0.000000e+00> : vector<2x8xf32>
    %87 = vector.multi_reduction <add>, %86, %cst_29 [2] : vector<2x8x8xf32> to vector<2x8xf32>
    %88 = vector.shape_cast %87 : vector<2x8xf32> to vector<2x8x1xf32>
    %89 = tpu.reciprocal %88 {approx = true} : vector<2x8x1xf32> -> vector<2x8x1xf32>
    %90 = vector.broadcast %89 : vector<2x8x1xf32> to vector<2x8x8xf32>
    %91 = arith.mulf %86, %90 : vector<2x8x8xf32>
    %92 = arith.truncf %91 : vector<2x8x8xf32> to vector<2x8x8xbf16>
    "tpu.trace_start"() <{level = 10 : i32, message = "bqk,bkd->bqd"}> : () -> ()
    %cst_30 = arith.constant dense<0.000000e+00> : vector<2x8x8xf32>
    %93 = tpu.matmul %92, %78, %cst_30 {dimension_numbers = #tpu.dot_dimension_numbers<[2], [1], [1], [2], [0, 0, 0, 1, 1, 2], [0], [0]>} : vector<2x8x8xbf16>, vector<2x8x8xbf16>, vector<2x8x8xf32> -> vector<2x8x8xf32>
    "tpu.trace_stop"() : () -> ()
    %94 = vector.extract_strided_slice %35 {offsets = [0, 0, 24], sizes = [2, 8, 8], strides = [1, 1, 1]} : vector<2x8x32xbf16> to vector<2x8x8xbf16>
    %95 = vector.extract_strided_slice %37 {offsets = [0, 0, 24], sizes = [2, 8, 8], strides = [1, 1, 1]} : vector<2x8x32xbf16> to vector<2x8x8xbf16>
    %96 = vector.extract_strided_slice %39 {offsets = [0, 0, 24], sizes = [2, 8, 8], strides = [1, 1, 1]} : vector<2x8x32xbf16> to vector<2x8x8xbf16>
    "tpu.trace_start"() <{level = 10 : i32, message = "bqd,bkd->bqk"}> : () -> ()
    %cst_31 = arith.constant dense<0.000000e+00> : vector<2x8x8xf32>
    %97 = tpu.matmul %94, %95, %cst_31 {dimension_numbers = #tpu.dot_dimension_numbers<[2], [2], [1], [1], [0, 0, 0, 1, 1, 1], [0], [0]>} : vector<2x8x8xbf16>, vector<2x8x8xbf16>, vector<2x8x8xf32> -> vector<2x8x8xf32>
    "tpu.trace_stop"() : () -> ()
    %cst_32 = arith.constant 0.353553385 : f32
    %98 = vector.broadcast %cst_32 : f32 to vector<2x8x8xf32>
    %99 = arith.mulf %97, %98 : vector<2x8x8xf32>
    %cst_33 = arith.constant dense<0xFF800000> : vector<2x8xf32>
    %100 = vector.multi_reduction <maximumf>, %99, %cst_33 [2] : vector<2x8x8xf32> to vector<2x8xf32>
    %101 = vector.shape_cast %100 : vector<2x8xf32> to vector<2x8x1xf32>
    %102 = vector.broadcast %101 : vector<2x8x1xf32> to vector<2x8x8xf32>
    %103 = arith.subf %99, %102 : vector<2x8x8xf32>
    %104 = math.exp %103 : vector<2x8x8xf32>
    %cst_34 = arith.constant dense<0.000000e+00> : vector<2x8xf32>
    %105 = vector.multi_reduction <add>, %104, %cst_34 [2] : vector<2x8x8xf32> to vector<2x8xf32>
    %106 = vector.shape_cast %105 : vector<2x8xf32> to vector<2x8x1xf32>
    %107 = tpu.reciprocal %106 {approx = true} : vector<2x8x1xf32> -> vector<2x8x1xf32>
    %108 = vector.broadcast %107 : vector<2x8x1xf32> to vector<2x8x8xf32>
    %109 = arith.mulf %104, %108 : vector<2x8x8xf32>
    %110 = arith.truncf %109 : vector<2x8x8xf32> to vector<2x8x8xbf16>
    "tpu.trace_start"() <{level = 10 : i32, message = "bqk,bkd->bqd"}> : () -> ()
    %cst_35 = arith.constant dense<0.000000e+00> : vector<2x8x8xf32>
    %111 = tpu.matmul %110, %96, %cst_35 {dimension_numbers = #tpu.dot_dimension_numbers<[2], [1], [1], [2], [0, 0, 0, 1, 1, 2], [0], [0]>} : vector<2x8x8xbf16>, vector<2x8x8xbf16>, vector<2x8x8xf32> -> vector<2x8x8xf32>
    "tpu.trace_stop"() : () -> ()
    %112 = tpu.concatenate %57, %75, %93, %111 in 2 : vector<2x8x8xf32>, vector<2x8x8xf32>, vector<2x8x8xf32>, vector<2x8x8xf32> -> vector<2x8x32xf32>
    %113 = vector.shape_cast %112 : vector<2x8x32xf32> to vector<16x32xf32>
    %c0_36 = arith.constant 0 : index
    %c0_37 = arith.constant 0 : index
    %c0_38 = arith.constant 0 : index
    %114 = vector.load %arg6[%c0_36, %c0_37, %c0_38] : memref<2x32x32xbf16, #tpu.memory_space<vmem>>, vector<1x32x32xbf16>
    %115 = vector.shape_cast %114 : vector<1x32x32xbf16> to vector<32x32xbf16>
    %116 = arith.truncf %113 : vector<16x32xf32> to vector<16x32xbf16>
    %cst_39 = arith.constant dense<0.000000e+00> : vector<16x32xf32>
    %117 = tpu.matmul %116, %115, %cst_39 {dimension_numbers = #tpu.dot_dimension_numbers<[1], [0], [0], [1], [0, 0, 1, 1], [], []>} : vector<16x32xbf16>, vector<32x32xbf16>, vector<16x32xf32> -> vector<16x32xf32>
    %c0_40 = arith.constant 0 : index
    %c0_41 = arith.constant 0 : index
    %c0_42 = arith.constant 0 : index
    %118 = vector.load %arg7[%c0_40, %c0_41, %c0_42] : memref<2x1x32xf32, #tpu.memory_space<vmem>>, vector<1x1x32xf32>
    %119 = vector.shape_cast %118 : vector<1x1x32xf32> to vector<1x32xf32>
    %120 = vector.broadcast %119 : vector<1x32xf32> to vector<16x32xf32>
    %121 = arith.addf %117, %120 : vector<16x32xf32>
    %122 = arith.addf %121, %24 : vector<16x32xf32>
    %c0_43 = arith.constant 0 : index
    %c0_44 = arith.constant 0 : index
    %c0_45 = arith.constant 0 : index
    %123 = vector.load %arg8[%c0_43, %c0_44, %c0_45] : memref<2x1x32xf32, #tpu.memory_space<vmem>>, vector<1x1x32xf32>
    %124 = vector.shape_cast %123 : vector<1x1x32xf32> to vector<1x32xf32>
    %c0_46 = arith.constant 0 : index
    %c0_47 = arith.constant 0 : index
    %c0_48 = arith.constant 0 : index
    %125 = vector.load %arg9[%c0_46, %c0_47, %c0_48] : memref<2x1x32xf32, #tpu.memory_space<vmem>>, vector<1x1x32xf32>
    %126 = vector.shape_cast %125 : vector<1x1x32xf32> to vector<1x32xf32>
    %cst_49 = arith.constant dense<0.000000e+00> : vector<16xf32>
    %127 = vector.multi_reduction <add>, %122, %cst_49 [1] : vector<16x32xf32> to vector<16xf32>
    %128 = vector.shape_cast %127 : vector<16xf32> to vector<16x1xf32>
    %cst_50 = arith.constant 3.200000e+01 : f32
    %129 = vector.broadcast %cst_50 : f32 to vector<16x1xf32>
    %130 = arith.divf %128, %129 : vector<16x1xf32>
    %131 = vector.broadcast %130 : vector<16x1xf32> to vector<16x32xf32>
    %132 = arith.subf %122, %131 : vector<16x32xf32>
    %133 = arith.mulf %132, %132 : vector<16x32xf32>
    %cst_51 = arith.constant dense<0.000000e+00> : vector<16xf32>
    %134 = vector.multi_reduction <add>, %133, %cst_51 [1] : vector<16x32xf32> to vector<16xf32>
    %135 = vector.shape_cast %134 : vector<16xf32> to vector<16x1xf32>
    %cst_52 = arith.constant 3.200000e+01 : f32
    %136 = vector.broadcast %cst_52 : f32 to vector<16x1xf32>
    %137 = arith.divf %135, %136 : vector<16x1xf32>
    %138 = vector.broadcast %130 : vector<16x1xf32> to vector<16x32xf32>
    %139 = arith.subf %122, %138 : vector<16x32xf32>
    %cst_53 = arith.constant 9.99999996E-13 : f32
    %140 = vector.broadcast %cst_53 : f32 to vector<16x1xf32>
    %141 = arith.addf %137, %140 : vector<16x1xf32>
    %142 = math.rsqrt %141 : vector<16x1xf32>
    %143 = vector.broadcast %142 : vector<16x1xf32> to vector<16x32xf32>
    %144 = arith.mulf %139, %143 : vector<16x32xf32>
    %145 = vector.broadcast %124 : vector<1x32xf32> to vector<16x32xf32>
    %146 = arith.mulf %144, %145 : vector<16x32xf32>
    %147 = vector.broadcast %126 : vector<1x32xf32> to vector<16x32xf32>
    %148 = arith.addf %146, %147 : vector<16x32xf32>
    %c0_54 = arith.constant 0 : index
    %c0_55 = arith.constant 0 : index
    %c0_56 = arith.constant 0 : index
    %149 = vector.load %arg10[%c0_54, %c0_55, %c0_56] : memref<2x32x64xbf16, #tpu.memory_space<vmem>>, vector<1x32x64xbf16>
    %150 = vector.shape_cast %149 : vector<1x32x64xbf16> to vector<32x64xbf16>
    %151 = arith.truncf %148 : vector<16x32xf32> to vector<16x32xbf16>
    %cst_57 = arith.constant dense<0.000000e+00> : vector<16x64xf32>
    %152 = tpu.matmul %151, %150, %cst_57 {dimension_numbers = #tpu.dot_dimension_numbers<[1], [0], [0], [1], [0, 0, 1, 1], [], []>} : vector<16x32xbf16>, vector<32x64xbf16>, vector<16x64xf32> -> vector<16x64xf32>
    %c0_58 = arith.constant 0 : index
    %c0_59 = arith.constant 0 : index
    %c0_60 = arith.constant 0 : index
    %153 = vector.load %arg11[%c0_58, %c0_59, %c0_60] : memref<2x1x64xf32, #tpu.memory_space<vmem>>, vector<1x1x64xf32>
    %154 = vector.shape_cast %153 : vector<1x1x64xf32> to vector<1x64xf32>
    %155 = vector.broadcast %154 : vector<1x64xf32> to vector<16x64xf32>
    %156 = arith.addf %152, %155 : vector<16x64xf32>
    %cst_61 = arith.constant 5.000000e-01 : f32
    %157 = vector.broadcast %cst_61 : f32 to vector<16x64xf32>
    %158 = arith.mulf %157, %156 : vector<16x64xf32>
    %cst_62 = arith.constant 4.471500e-02 : f32
    %159 = vector.broadcast %cst_62 : f32 to vector<16x64xf32>
    %160 = arith.mulf %159, %156 : vector<16x64xf32>
    %161 = arith.mulf %160, %156 : vector<16x64xf32>
    %162 = arith.mulf %161, %156 : vector<16x64xf32>
    %163 = arith.addf %156, %162 : vector<16x64xf32>
    %cst_63 = arith.constant 0.797884583 : f32
    %164 = vector.broadcast %cst_63 : f32 to vector<16x64xf32>
    %165 = arith.mulf %164, %163 : vector<16x64xf32>
    %166 = math.tanh %165 : vector<16x64xf32>
    %cst_64 = arith.constant 1.000000e+00 : f32
    %167 = vector.broadcast %cst_64 : f32 to vector<16x64xf32>
    %168 = arith.addf %167, %166 : vector<16x64xf32>
    %169 = arith.mulf %158, %168 : vector<16x64xf32>
    %c0_65 = arith.constant 0 : index
    %c0_66 = arith.constant 0 : index
    %c0_67 = arith.constant 0 : index
    %170 = vector.load %arg12[%c0_65, %c0_66, %c0_67] : memref<2x64x32xbf16, #tpu.memory_space<vmem>>, vector<1x64x32xbf16>
    %171 = vector.shape_cast %170 : vector<1x64x32xbf16> to vector<64x32xbf16>
    %172 = arith.truncf %169 : vector<16x64xf32> to vector<16x64xbf16>
    %cst_68 = arith.constant dense<0.000000e+00> : vector<16x32xf32>
    %173 = tpu.matmul %172, %171, %cst_68 {dimension_numbers = #tpu.dot_dimension_numbers<[1], [0], [0], [1], [0, 0, 1, 1], [], []>} : vector<16x64xbf16>, vector<64x32xbf16>, vector<16x32xf32> -> vector<16x32xf32>
    %c0_69 = arith.constant 0 : index
    %c0_70 = arith.constant 0 : index
    %c0_71 = arith.constant 0 : index
    %174 = vector.load %arg13[%c0_69, %c0_70, %c0_71] : memref<2x1x32xf32, #tpu.memory_space<vmem>>, vector<1x1x32xf32>
    %175 = vector.shape_cast %174 : vector<1x1x32xf32> to vector<1x32xf32>
    %176 = vector.broadcast %175 : vector<1x32xf32> to vector<16x32xf32>
    %177 = arith.addf %173, %176 : vector<16x32xf32>
    %178 = arith.addf %177, %148 : vector<16x32xf32>
    %c0_72 = arith.constant 0 : index
    %c0_73 = arith.constant 0 : index
    %c0_74 = arith.constant 0 : index
    %179 = vector.load %arg14[%c0_72, %c0_73, %c0_74] : memref<2x1x32xf32, #tpu.memory_space<vmem>>, vector<1x1x32xf32>
    %180 = vector.shape_cast %179 : vector<1x1x32xf32> to vector<1x32xf32>
    %c0_75 = arith.constant 0 : index
    %c0_76 = arith.constant 0 : index
    %c0_77 = arith.constant 0 : index
    %181 = vector.load %arg15[%c0_75, %c0_76, %c0_77] : memref<2x1x32xf32, #tpu.memory_space<vmem>>, vector<1x1x32xf32>
    %182 = vector.shape_cast %181 : vector<1x1x32xf32> to vector<1x32xf32>
    %cst_78 = arith.constant dense<0.000000e+00> : vector<16xf32>
    %183 = vector.multi_reduction <add>, %178, %cst_78 [1] : vector<16x32xf32> to vector<16xf32>
    %184 = vector.shape_cast %183 : vector<16xf32> to vector<16x1xf32>
    %cst_79 = arith.constant 3.200000e+01 : f32
    %185 = vector.broadcast %cst_79 : f32 to vector<16x1xf32>
    %186 = arith.divf %184, %185 : vector<16x1xf32>
    %187 = vector.broadcast %186 : vector<16x1xf32> to vector<16x32xf32>
    %188 = arith.subf %178, %187 : vector<16x32xf32>
    %189 = arith.mulf %188, %188 : vector<16x32xf32>
    %cst_80 = arith.constant dense<0.000000e+00> : vector<16xf32>
    %190 = vector.multi_reduction <add>, %189, %cst_80 [1] : vector<16x32xf32> to vector<16xf32>
    %191 = vector.shape_cast %190 : vector<16xf32> to vector<16x1xf32>
    %cst_81 = arith.constant 3.200000e+01 : f32
    %192 = vector.broadcast %cst_81 : f32 to vector<16x1xf32>
    %193 = arith.divf %191, %192 : vector<16x1xf32>
    %194 = vector.broadcast %186 : vector<16x1xf32> to vector<16x32xf32>
    %195 = arith.subf %178, %194 : vector<16x32xf32>
    %cst_82 = arith.constant 9.99999996E-13 : f32
    %196 = vector.broadcast %cst_82 : f32 to vector<16x1xf32>
    %197 = arith.addf %193, %196 : vector<16x1xf32>
    %198 = math.rsqrt %197 : vector<16x1xf32>
    %199 = vector.broadcast %198 : vector<16x1xf32> to vector<16x32xf32>
    %200 = arith.mulf %195, %199 : vector<16x32xf32>
    %201 = vector.broadcast %180 : vector<1x32xf32> to vector<16x32xf32>
    %202 = arith.mulf %200, %201 : vector<16x32xf32>
    %203 = vector.broadcast %182 : vector<1x32xf32> to vector<16x32xf32>
    %204 = arith.addf %202, %203 : vector<16x32xf32>
    %c1 = arith.constant 1 : index
    %c0_83 = arith.constant 0 : index
    %c0_84 = arith.constant 0 : index
    %205 = vector.load %arg4[%c1, %c0_83, %c0_84] : memref<2x32x96xbf16, #tpu.memory_space<vmem>>, vector<1x32x96xbf16>
    %206 = vector.shape_cast %205 : vector<1x32x96xbf16> to vector<32x96xbf16>
    %207 = arith.truncf %204 : vector<16x32xf32> to vector<16x32xbf16>
    %cst_85 = arith.constant dense<0.000000e+00> : vector<16x96xf32>
    %208 = tpu.matmul %207, %206, %cst_85 {dimension_numbers = #tpu.dot_dimension_numbers<[1], [0], [0], [1], [0, 0, 1, 1], [], []>} : vector<16x32xbf16>, vector<32x96xbf16>, vector<16x96xf32> -> vector<16x96xf32>
    %c1_86 = arith.constant 1 : index
    %c0_87 = arith.constant 0 : index
    %c0_88 = arith.constant 0 : index
    %209 = vector.load %arg5[%c1_86, %c0_87, %c0_88] : memref<2x1x96xf32, #tpu.memory_space<vmem>>, vector<1x1x96xf32>
    %210 = vector.shape_cast %209 : vector<1x1x96xf32> to vector<1x96xf32>
    %211 = vector.broadcast %210 : vector<1x96xf32> to vector<16x96xf32>
    %212 = arith.addf %208, %211 : vector<16x96xf32>
    %213 = vector.shape_cast %212 : vector<16x96xf32> to vector<2x8x96xf32>
    %214 = vector.extract_strided_slice %213 {offsets = [0, 0, 0], sizes = [2, 8, 32], strides = [1, 1, 1]} : vector<2x8x96xf32> to vector<2x8x32xf32>
    %215 = arith.truncf %214 : vector<2x8x32xf32> to vector<2x8x32xbf16>
    %216 = vector.extract_strided_slice %213 {offsets = [0, 0, 32], sizes = [2, 8, 32], strides = [1, 1, 1]} : vector<2x8x96xf32> to vector<2x8x32xf32>
    %217 = arith.truncf %216 : vector<2x8x32xf32> to vector<2x8x32xbf16>
    %218 = vector.extract_strided_slice %213 {offsets = [0, 0, 64], sizes = [2, 8, 32], strides = [1, 1, 1]} : vector<2x8x96xf32> to vector<2x8x32xf32>
    %219 = arith.truncf %218 : vector<2x8x32xf32> to vector<2x8x32xbf16>
    %220 = vector.extract_strided_slice %215 {offsets = [0, 0, 0], sizes = [2, 8, 8], strides = [1, 1, 1]} : vector<2x8x32xbf16> to vector<2x8x8xbf16>
    %221 = vector.extract_strided_slice %217 {offsets = [0, 0, 0], sizes = [2, 8, 8], strides = [1, 1, 1]} : vector<2x8x32xbf16> to vector<2x8x8xbf16>
    %222 = vector.extract_strided_slice %219 {offsets = [0, 0, 0], sizes = [2, 8, 8], strides = [1, 1, 1]} : vector<2x8x32xbf16> to vector<2x8x8xbf16>
    "tpu.trace_start"() <{level = 10 : i32, message = "bqd,bkd->bqk"}> : () -> ()
    %cst_89 = arith.constant dense<0.000000e+00> : vector<2x8x8xf32>
    %223 = tpu.matmul %220, %221, %cst_89 {dimension_numbers = #tpu.dot_dimension_numbers<[2], [2], [1], [1], [0, 0, 0, 1, 1, 1], [0], [0]>} : vector<2x8x8xbf16>, vector<2x8x8xbf16>, vector<2x8x8xf32> -> vector<2x8x8xf32>
    "tpu.trace_stop"() : () -> ()
    %cst_90 = arith.constant 0.353553385 : f32
    %224 = vector.broadcast %cst_90 : f32 to vector<2x8x8xf32>
    %225 = arith.mulf %223, %224 : vector<2x8x8xf32>
    %cst_91 = arith.constant dense<0xFF800000> : vector<2x8xf32>
    %226 = vector.multi_reduction <maximumf>, %225, %cst_91 [2] : vector<2x8x8xf32> to vector<2x8xf32>
    %227 = vector.shape_cast %226 : vector<2x8xf32> to vector<2x8x1xf32>
    %228 = vector.broadcast %227 : vector<2x8x1xf32> to vector<2x8x8xf32>
    %229 = arith.subf %225, %228 : vector<2x8x8xf32>
    %230 = math.exp %229 : vector<2x8x8xf32>
    %cst_92 = arith.constant dense<0.000000e+00> : vector<2x8xf32>
    %231 = vector.multi_reduction <add>, %230, %cst_92 [2] : vector<2x8x8xf32> to vector<2x8xf32>
    %232 = vector.shape_cast %231 : vector<2x8xf32> to vector<2x8x1xf32>
    %233 = tpu.reciprocal %232 {approx = true} : vector<2x8x1xf32> -> vector<2x8x1xf32>
    %234 = vector.broadcast %233 : vector<2x8x1xf32> to vector<2x8x8xf32>
    %235 = arith.mulf %230, %234 : vector<2x8x8xf32>
    %236 = arith.truncf %235 : vector<2x8x8xf32> to vector<2x8x8xbf16>
    "tpu.trace_start"() <{level = 10 : i32, message = "bqk,bkd->bqd"}> : () -> ()
    %cst_93 = arith.constant dense<0.000000e+00> : vector<2x8x8xf32>
    %237 = tpu.matmul %236, %222, %cst_93 {dimension_numbers = #tpu.dot_dimension_numbers<[2], [1], [1], [2], [0, 0, 0, 1, 1, 2], [0], [0]>} : vector<2x8x8xbf16>, vector<2x8x8xbf16>, vector<2x8x8xf32> -> vector<2x8x8xf32>
    "tpu.trace_stop"() : () -> ()
    %238 = vector.extract_strided_slice %215 {offsets = [0, 0, 8], sizes = [2, 8, 8], strides = [1, 1, 1]} : vector<2x8x32xbf16> to vector<2x8x8xbf16>
    %239 = vector.extract_strided_slice %217 {offsets = [0, 0, 8], sizes = [2, 8, 8], strides = [1, 1, 1]} : vector<2x8x32xbf16> to vector<2x8x8xbf16>
    %240 = vector.extract_strided_slice %219 {offsets = [0, 0, 8], sizes = [2, 8, 8], strides = [1, 1, 1]} : vector<2x8x32xbf16> to vector<2x8x8xbf16>
    "tpu.trace_start"() <{level = 10 : i32, message = "bqd,bkd->bqk"}> : () -> ()
    %cst_94 = arith.constant dense<0.000000e+00> : vector<2x8x8xf32>
    %241 = tpu.matmul %238, %239, %cst_94 {dimension_numbers = #tpu.dot_dimension_numbers<[2], [2], [1], [1], [0, 0, 0, 1, 1, 1], [0], [0]>} : vector<2x8x8xbf16>, vector<2x8x8xbf16>, vector<2x8x8xf32> -> vector<2x8x8xf32>
    "tpu.trace_stop"() : () -> ()
    %cst_95 = arith.constant 0.353553385 : f32
    %242 = vector.broadcast %cst_95 : f32 to vector<2x8x8xf32>
    %243 = arith.mulf %241, %242 : vector<2x8x8xf32>
    %cst_96 = arith.constant dense<0xFF800000> : vector<2x8xf32>
    %244 = vector.multi_reduction <maximumf>, %243, %cst_96 [2] : vector<2x8x8xf32> to vector<2x8xf32>
    %245 = vector.shape_cast %244 : vector<2x8xf32> to vector<2x8x1xf32>
    %246 = vector.broadcast %245 : vector<2x8x1xf32> to vector<2x8x8xf32>
    %247 = arith.subf %243, %246 : vector<2x8x8xf32>
    %248 = math.exp %247 : vector<2x8x8xf32>
    %cst_97 = arith.constant dense<0.000000e+00> : vector<2x8xf32>
    %249 = vector.multi_reduction <add>, %248, %cst_97 [2] : vector<2x8x8xf32> to vector<2x8xf32>
    %250 = vector.shape_cast %249 : vector<2x8xf32> to vector<2x8x1xf32>
    %251 = tpu.reciprocal %250 {approx = true} : vector<2x8x1xf32> -> vector<2x8x1xf32>
    %252 = vector.broadcast %251 : vector<2x8x1xf32> to vector<2x8x8xf32>
    %253 = arith.mulf %248, %252 : vector<2x8x8xf32>
    %254 = arith.truncf %253 : vector<2x8x8xf32> to vector<2x8x8xbf16>
    "tpu.trace_start"() <{level = 10 : i32, message = "bqk,bkd->bqd"}> : () -> ()
    %cst_98 = arith.constant dense<0.000000e+00> : vector<2x8x8xf32>
    %255 = tpu.matmul %254, %240, %cst_98 {dimension_numbers = #tpu.dot_dimension_numbers<[2], [1], [1], [2], [0, 0, 0, 1, 1, 2], [0], [0]>} : vector<2x8x8xbf16>, vector<2x8x8xbf16>, vector<2x8x8xf32> -> vector<2x8x8xf32>
    "tpu.trace_stop"() : () -> ()
    %256 = vector.extract_strided_slice %215 {offsets = [0, 0, 16], sizes = [2, 8, 8], strides = [1, 1, 1]} : vector<2x8x32xbf16> to vector<2x8x8xbf16>
    %257 = vector.extract_strided_slice %217 {offsets = [0, 0, 16], sizes = [2, 8, 8], strides = [1, 1, 1]} : vector<2x8x32xbf16> to vector<2x8x8xbf16>
    %258 = vector.extract_strided_slice %219 {offsets = [0, 0, 16], sizes = [2, 8, 8], strides = [1, 1, 1]} : vector<2x8x32xbf16> to vector<2x8x8xbf16>
    "tpu.trace_start"() <{level = 10 : i32, message = "bqd,bkd->bqk"}> : () -> ()
    %cst_99 = arith.constant dense<0.000000e+00> : vector<2x8x8xf32>
    %259 = tpu.matmul %256, %257, %cst_99 {dimension_numbers = #tpu.dot_dimension_numbers<[2], [2], [1], [1], [0, 0, 0, 1, 1, 1], [0], [0]>} : vector<2x8x8xbf16>, vector<2x8x8xbf16>, vector<2x8x8xf32> -> vector<2x8x8xf32>
    "tpu.trace_stop"() : () -> ()
    %cst_100 = arith.constant 0.353553385 : f32
    %260 = vector.broadcast %cst_100 : f32 to vector<2x8x8xf32>
    %261 = arith.mulf %259, %260 : vector<2x8x8xf32>
    %cst_101 = arith.constant dense<0xFF800000> : vector<2x8xf32>
    %262 = vector.multi_reduction <maximumf>, %261, %cst_101 [2] : vector<2x8x8xf32> to vector<2x8xf32>
    %263 = vector.shape_cast %262 : vector<2x8xf32> to vector<2x8x1xf32>
    %264 = vector.broadcast %263 : vector<2x8x1xf32> to vector<2x8x8xf32>
    %265 = arith.subf %261, %264 : vector<2x8x8xf32>
    %266 = math.exp %265 : vector<2x8x8xf32>
    %cst_102 = arith.constant dense<0.000000e+00> : vector<2x8xf32>
    %267 = vector.multi_reduction <add>, %266, %cst_102 [2] : vector<2x8x8xf32> to vector<2x8xf32>
    %268 = vector.shape_cast %267 : vector<2x8xf32> to vector<2x8x1xf32>
    %269 = tpu.reciprocal %268 {approx = true} : vector<2x8x1xf32> -> vector<2x8x1xf32>
    %270 = vector.broadcast %269 : vector<2x8x1xf32> to vector<2x8x8xf32>
    %271 = arith.mulf %266, %270 : vector<2x8x8xf32>
    %272 = arith.truncf %271 : vector<2x8x8xf32> to vector<2x8x8xbf16>
    "tpu.trace_start"() <{level = 10 : i32, message = "bqk,bkd->bqd"}> : () -> ()
    %cst_103 = arith.constant dense<0.000000e+00> : vector<2x8x8xf32>
    %273 = tpu.matmul %272, %258, %cst_103 {dimension_numbers = #tpu.dot_dimension_numbers<[2], [1], [1], [2], [0, 0, 0, 1, 1, 2], [0], [0]>} : vector<2x8x8xbf16>, vector<2x8x8xbf16>, vector<2x8x8xf32> -> vector<2x8x8xf32>
    "tpu.trace_stop"() : () -> ()
    %274 = vector.extract_strided_slice %215 {offsets = [0, 0, 24], sizes = [2, 8, 8], strides = [1, 1, 1]} : vector<2x8x32xbf16> to vector<2x8x8xbf16>
    %275 = vector.extract_strided_slice %217 {offsets = [0, 0, 24], sizes = [2, 8, 8], strides = [1, 1, 1]} : vector<2x8x32xbf16> to vector<2x8x8xbf16>
    %276 = vector.extract_strided_slice %219 {offsets = [0, 0, 24], sizes = [2, 8, 8], strides = [1, 1, 1]} : vector<2x8x32xbf16> to vector<2x8x8xbf16>
    "tpu.trace_start"() <{level = 10 : i32, message = "bqd,bkd->bqk"}> : () -> ()
    %cst_104 = arith.constant dense<0.000000e+00> : vector<2x8x8xf32>
    %277 = tpu.matmul %274, %275, %cst_104 {dimension_numbers = #tpu.dot_dimension_numbers<[2], [2], [1], [1], [0, 0, 0, 1, 1, 1], [0], [0]>} : vector<2x8x8xbf16>, vector<2x8x8xbf16>, vector<2x8x8xf32> -> vector<2x8x8xf32>
    "tpu.trace_stop"() : () -> ()
    %cst_105 = arith.constant 0.353553385 : f32
    %278 = vector.broadcast %cst_105 : f32 to vector<2x8x8xf32>
    %279 = arith.mulf %277, %278 : vector<2x8x8xf32>
    %cst_106 = arith.constant dense<0xFF800000> : vector<2x8xf32>
    %280 = vector.multi_reduction <maximumf>, %279, %cst_106 [2] : vector<2x8x8xf32> to vector<2x8xf32>
    %281 = vector.shape_cast %280 : vector<2x8xf32> to vector<2x8x1xf32>
    %282 = vector.broadcast %281 : vector<2x8x1xf32> to vector<2x8x8xf32>
    %283 = arith.subf %279, %282 : vector<2x8x8xf32>
    %284 = math.exp %283 : vector<2x8x8xf32>
    %cst_107 = arith.constant dense<0.000000e+00> : vector<2x8xf32>
    %285 = vector.multi_reduction <add>, %284, %cst_107 [2] : vector<2x8x8xf32> to vector<2x8xf32>
    %286 = vector.shape_cast %285 : vector<2x8xf32> to vector<2x8x1xf32>
    %287 = tpu.reciprocal %286 {approx = true} : vector<2x8x1xf32> -> vector<2x8x1xf32>
    %288 = vector.broadcast %287 : vector<2x8x1xf32> to vector<2x8x8xf32>
    %289 = arith.mulf %284, %288 : vector<2x8x8xf32>
    %290 = arith.truncf %289 : vector<2x8x8xf32> to vector<2x8x8xbf16>
    "tpu.trace_start"() <{level = 10 : i32, message = "bqk,bkd->bqd"}> : () -> ()
    %cst_108 = arith.constant dense<0.000000e+00> : vector<2x8x8xf32>
    %291 = tpu.matmul %290, %276, %cst_108 {dimension_numbers = #tpu.dot_dimension_numbers<[2], [1], [1], [2], [0, 0, 0, 1, 1, 2], [0], [0]>} : vector<2x8x8xbf16>, vector<2x8x8xbf16>, vector<2x8x8xf32> -> vector<2x8x8xf32>
    "tpu.trace_stop"() : () -> ()
    %292 = tpu.concatenate %237, %255, %273, %291 in 2 : vector<2x8x8xf32>, vector<2x8x8xf32>, vector<2x8x8xf32>, vector<2x8x8xf32> -> vector<2x8x32xf32>
    %293 = vector.shape_cast %292 : vector<2x8x32xf32> to vector<16x32xf32>
    %c1_109 = arith.constant 1 : index
    %c0_110 = arith.constant 0 : index
    %c0_111 = arith.constant 0 : index
    %294 = vector.load %arg6[%c1_109, %c0_110, %c0_111] : memref<2x32x32xbf16, #tpu.memory_space<vmem>>, vector<1x32x32xbf16>
    %295 = vector.shape_cast %294 : vector<1x32x32xbf16> to vector<32x32xbf16>
    %296 = arith.truncf %293 : vector<16x32xf32> to vector<16x32xbf16>
    %cst_112 = arith.constant dense<0.000000e+00> : vector<16x32xf32>
    %297 = tpu.matmul %296, %295, %cst_112 {dimension_numbers = #tpu.dot_dimension_numbers<[1], [0], [0], [1], [0, 0, 1, 1], [], []>} : vector<16x32xbf16>, vector<32x32xbf16>, vector<16x32xf32> -> vector<16x32xf32>
    %c1_113 = arith.constant 1 : index
    %c0_114 = arith.constant 0 : index
    %c0_115 = arith.constant 0 : index
    %298 = vector.load %arg7[%c1_113, %c0_114, %c0_115] : memref<2x1x32xf32, #tpu.memory_space<vmem>>, vector<1x1x32xf32>
    %299 = vector.shape_cast %298 : vector<1x1x32xf32> to vector<1x32xf32>
    %300 = vector.broadcast %299 : vector<1x32xf32> to vector<16x32xf32>
    %301 = arith.addf %297, %300 : vector<16x32xf32>
    %302 = arith.addf %301, %204 : vector<16x32xf32>
    %c1_116 = arith.constant 1 : index
    %c0_117 = arith.constant 0 : index
    %c0_118 = arith.constant 0 : index
    %303 = vector.load %arg8[%c1_116, %c0_117, %c0_118] : memref<2x1x32xf32, #tpu.memory_space<vmem>>, vector<1x1x32xf32>
    %304 = vector.shape_cast %303 : vector<1x1x32xf32> to vector<1x32xf32>
    %c1_119 = arith.constant 1 : index
    %c0_120 = arith.constant 0 : index
    %c0_121 = arith.constant 0 : index
    %305 = vector.load %arg9[%c1_119, %c0_120, %c0_121] : memref<2x1x32xf32, #tpu.memory_space<vmem>>, vector<1x1x32xf32>
    %306 = vector.shape_cast %305 : vector<1x1x32xf32> to vector<1x32xf32>
    %cst_122 = arith.constant dense<0.000000e+00> : vector<16xf32>
    %307 = vector.multi_reduction <add>, %302, %cst_122 [1] : vector<16x32xf32> to vector<16xf32>
    %308 = vector.shape_cast %307 : vector<16xf32> to vector<16x1xf32>
    %cst_123 = arith.constant 3.200000e+01 : f32
    %309 = vector.broadcast %cst_123 : f32 to vector<16x1xf32>
    %310 = arith.divf %308, %309 : vector<16x1xf32>
    %311 = vector.broadcast %310 : vector<16x1xf32> to vector<16x32xf32>
    %312 = arith.subf %302, %311 : vector<16x32xf32>
    %313 = arith.mulf %312, %312 : vector<16x32xf32>
    %cst_124 = arith.constant dense<0.000000e+00> : vector<16xf32>
    %314 = vector.multi_reduction <add>, %313, %cst_124 [1] : vector<16x32xf32> to vector<16xf32>
    %315 = vector.shape_cast %314 : vector<16xf32> to vector<16x1xf32>
    %cst_125 = arith.constant 3.200000e+01 : f32
    %316 = vector.broadcast %cst_125 : f32 to vector<16x1xf32>
    %317 = arith.divf %315, %316 : vector<16x1xf32>
    %318 = vector.broadcast %310 : vector<16x1xf32> to vector<16x32xf32>
    %319 = arith.subf %302, %318 : vector<16x32xf32>
    %cst_126 = arith.constant 9.99999996E-13 : f32
    %320 = vector.broadcast %cst_126 : f32 to vector<16x1xf32>
    %321 = arith.addf %317, %320 : vector<16x1xf32>
    %322 = math.rsqrt %321 : vector<16x1xf32>
    %323 = vector.broadcast %322 : vector<16x1xf32> to vector<16x32xf32>
    %324 = arith.mulf %319, %323 : vector<16x32xf32>
    %325 = vector.broadcast %304 : vector<1x32xf32> to vector<16x32xf32>
    %326 = arith.mulf %324, %325 : vector<16x32xf32>
    %327 = vector.broadcast %306 : vector<1x32xf32> to vector<16x32xf32>
    %328 = arith.addf %326, %327 : vector<16x32xf32>
    %c1_127 = arith.constant 1 : index
    %c0_128 = arith.constant 0 : index
    %c0_129 = arith.constant 0 : index
    %329 = vector.load %arg10[%c1_127, %c0_128, %c0_129] : memref<2x32x64xbf16, #tpu.memory_space<vmem>>, vector<1x32x64xbf16>
    %330 = vector.shape_cast %329 : vector<1x32x64xbf16> to vector<32x64xbf16>
    %331 = arith.truncf %328 : vector<16x32xf32> to vector<16x32xbf16>
    %cst_130 = arith.constant dense<0.000000e+00> : vector<16x64xf32>
    %332 = tpu.matmul %331, %330, %cst_130 {dimension_numbers = #tpu.dot_dimension_numbers<[1], [0], [0], [1], [0, 0, 1, 1], [], []>} : vector<16x32xbf16>, vector<32x64xbf16>, vector<16x64xf32> -> vector<16x64xf32>
    %c1_131 = arith.constant 1 : index
    %c0_132 = arith.constant 0 : index
    %c0_133 = arith.constant 0 : index
    %333 = vector.load %arg11[%c1_131, %c0_132, %c0_133] : memref<2x1x64xf32, #tpu.memory_space<vmem>>, vector<1x1x64xf32>
    %334 = vector.shape_cast %333 : vector<1x1x64xf32> to vector<1x64xf32>
    %335 = vector.broadcast %334 : vector<1x64xf32> to vector<16x64xf32>
    %336 = arith.addf %332, %335 : vector<16x64xf32>
    %cst_134 = arith.constant 5.000000e-01 : f32
    %337 = vector.broadcast %cst_134 : f32 to vector<16x64xf32>
    %338 = arith.mulf %337, %336 : vector<16x64xf32>
    %cst_135 = arith.constant 4.471500e-02 : f32
    %339 = vector.broadcast %cst_135 : f32 to vector<16x64xf32>
    %340 = arith.mulf %339, %336 : vector<16x64xf32>
    %341 = arith.mulf %340, %336 : vector<16x64xf32>
    %342 = arith.mulf %341, %336 : vector<16x64xf32>
    %343 = arith.addf %336, %342 : vector<16x64xf32>
    %cst_136 = arith.constant 0.797884583 : f32
    %344 = vector.broadcast %cst_136 : f32 to vector<16x64xf32>
    %345 = arith.mulf %344, %343 : vector<16x64xf32>
    %346 = math.tanh %345 : vector<16x64xf32>
    %cst_137 = arith.constant 1.000000e+00 : f32
    %347 = vector.broadcast %cst_137 : f32 to vector<16x64xf32>
    %348 = arith.addf %347, %346 : vector<16x64xf32>
    %349 = arith.mulf %338, %348 : vector<16x64xf32>
    %c1_138 = arith.constant 1 : index
    %c0_139 = arith.constant 0 : index
    %c0_140 = arith.constant 0 : index
    %350 = vector.load %arg12[%c1_138, %c0_139, %c0_140] : memref<2x64x32xbf16, #tpu.memory_space<vmem>>, vector<1x64x32xbf16>
    %351 = vector.shape_cast %350 : vector<1x64x32xbf16> to vector<64x32xbf16>
    %352 = arith.truncf %349 : vector<16x64xf32> to vector<16x64xbf16>
    %cst_141 = arith.constant dense<0.000000e+00> : vector<16x32xf32>
    %353 = tpu.matmul %352, %351, %cst_141 {dimension_numbers = #tpu.dot_dimension_numbers<[1], [0], [0], [1], [0, 0, 1, 1], [], []>} : vector<16x64xbf16>, vector<64x32xbf16>, vector<16x32xf32> -> vector<16x32xf32>
    %c1_142 = arith.constant 1 : index
    %c0_143 = arith.constant 0 : index
    %c0_144 = arith.constant 0 : index
    %354 = vector.load %arg13[%c1_142, %c0_143, %c0_144] : memref<2x1x32xf32, #tpu.memory_space<vmem>>, vector<1x1x32xf32>
    %355 = vector.shape_cast %354 : vector<1x1x32xf32> to vector<1x32xf32>
    %356 = vector.broadcast %355 : vector<1x32xf32> to vector<16x32xf32>
    %357 = arith.addf %353, %356 : vector<16x32xf32>
    %358 = arith.addf %357, %328 : vector<16x32xf32>
    %c1_145 = arith.constant 1 : index
    %c0_146 = arith.constant 0 : index
    %c0_147 = arith.constant 0 : index
    %359 = vector.load %arg14[%c1_145, %c0_146, %c0_147] : memref<2x1x32xf32, #tpu.memory_space<vmem>>, vector<1x1x32xf32>
    %360 = vector.shape_cast %359 : vector<1x1x32xf32> to vector<1x32xf32>
    %c1_148 = arith.constant 1 : index
    %c0_149 = arith.constant 0 : index
    %c0_150 = arith.constant 0 : index
    %361 = vector.load %arg15[%c1_148, %c0_149, %c0_150] : memref<2x1x32xf32, #tpu.memory_space<vmem>>, vector<1x1x32xf32>
    %362 = vector.shape_cast %361 : vector<1x1x32xf32> to vector<1x32xf32>
    %cst_151 = arith.constant dense<0.000000e+00> : vector<16xf32>
    %363 = vector.multi_reduction <add>, %358, %cst_151 [1] : vector<16x32xf32> to vector<16xf32>
    %364 = vector.shape_cast %363 : vector<16xf32> to vector<16x1xf32>
    %cst_152 = arith.constant 3.200000e+01 : f32
    %365 = vector.broadcast %cst_152 : f32 to vector<16x1xf32>
    %366 = arith.divf %364, %365 : vector<16x1xf32>
    %367 = vector.broadcast %366 : vector<16x1xf32> to vector<16x32xf32>
    %368 = arith.subf %358, %367 : vector<16x32xf32>
    %369 = arith.mulf %368, %368 : vector<16x32xf32>
    %cst_153 = arith.constant dense<0.000000e+00> : vector<16xf32>
    %370 = vector.multi_reduction <add>, %369, %cst_153 [1] : vector<16x32xf32> to vector<16xf32>
    %371 = vector.shape_cast %370 : vector<16xf32> to vector<16x1xf32>
    %cst_154 = arith.constant 3.200000e+01 : f32
    %372 = vector.broadcast %cst_154 : f32 to vector<16x1xf32>
    %373 = arith.divf %371, %372 : vector<16x1xf32>
    %374 = vector.broadcast %366 : vector<16x1xf32> to vector<16x32xf32>
    %375 = arith.subf %358, %374 : vector<16x32xf32>
    %cst_155 = arith.constant 9.99999996E-13 : f32
    %376 = vector.broadcast %cst_155 : f32 to vector<16x1xf32>
    %377 = arith.addf %373, %376 : vector<16x1xf32>
    %378 = math.rsqrt %377 : vector<16x1xf32>
    %379 = vector.broadcast %378 : vector<16x1xf32> to vector<16x32xf32>
    %380 = arith.mulf %375, %379 : vector<16x32xf32>
    %381 = vector.broadcast %360 : vector<1x32xf32> to vector<16x32xf32>
    %382 = arith.mulf %380, %381 : vector<16x32xf32>
    %383 = vector.broadcast %362 : vector<1x32xf32> to vector<16x32xf32>
    %384 = arith.addf %382, %383 : vector<16x32xf32>
    %385 = vector.shape_cast %384 : vector<16x32xf32> to vector<2x8x32xf32>
    %386 = vector.extract_strided_slice %385 {offsets = [0, 0, 0], sizes = [2, 1, 32], strides = [1, 1, 1]} : vector<2x8x32xf32> to vector<2x1x32xf32>
    %387 = vector.shape_cast %386 : vector<2x1x32xf32> to vector<2x32xf32>
    %c0_156 = arith.constant 0 : index
    %c0_157 = arith.constant 0 : index
    %388 = vector.load %arg16[%c0_156, %c0_157] : memref<32x32xbf16, #tpu.memory_space<vmem>>, vector<32x32xbf16>
    %389 = arith.truncf %387 : vector<2x32xf32> to vector<2x32xbf16>
    %cst_158 = arith.constant dense<0.000000e+00> : vector<2x32xf32>
    %390 = tpu.matmul %389, %388, %cst_158 {dimension_numbers = #tpu.dot_dimension_numbers<[1], [0], [0], [1], [0, 0, 1, 1], [], []>} : vector<2x32xbf16>, vector<32x32xbf16>, vector<2x32xf32> -> vector<2x32xf32>
    %c0_159 = arith.constant 0 : index
    %c0_160 = arith.constant 0 : index
    %391 = vector.load %arg17[%c0_159, %c0_160] : memref<1x32xf32, #tpu.memory_space<vmem>>, vector<1x32xf32>
    %392 = vector.broadcast %391 : vector<1x32xf32> to vector<2x32xf32>
    %393 = arith.addf %390, %392 : vector<2x32xf32>
    %394 = math.tanh %393 : vector<2x32xf32>
    %c0_161 = arith.constant 0 : index
    %c0_162 = arith.constant 0 : index
    %395 = vector.load %arg18[%c0_161, %c0_162] : memref<32x128xbf16, #tpu.memory_space<vmem>>, vector<32x128xbf16>
    %396 = arith.truncf %394 : vector<2x32xf32> to vector<2x32xbf16>
    %cst_163 = arith.constant dense<0.000000e+00> : vector<2x128xf32>
    %397 = tpu.matmul %396, %395, %cst_163 {dimension_numbers = #tpu.dot_dimension_numbers<[1], [0], [0], [1], [0, 0, 1, 1], [], []>} : vector<2x32xbf16>, vector<32x128xbf16>, vector<2x128xf32> -> vector<2x128xf32>
    %c0_164 = arith.constant 0 : index
    %c0_165 = arith.constant 0 : index
    %398 = vector.load %arg19[%c0_164, %c0_165] : memref<1x128xf32, #tpu.memory_space<vmem>>, vector<1x128xf32>
    %399 = vector.broadcast %398 : vector<1x128xf32> to vector<2x128xf32>
    %400 = arith.addf %397, %399 : vector<2x128xf32>
    %c0_166 = arith.constant 0 : index
    %c0_167 = arith.constant 0 : index
    %401 = vector.load %arg20[%c0_166, %c0_167] : memref<2x128xf32, #tpu.memory_space<vmem>>, vector<2x128xf32>
    tpu.vector_store %arg20[%c0_166, %c0_167], %400 {strides = array<i32>} : memref<2x128xf32, #tpu.memory_space<vmem>>, vector<2x128xf32>,
    %cst_168 = arith.constant dense<0xFF800000> : vector<2xf32>
    %402 = vector.multi_reduction <maximumf>, %400, %cst_168 [1] : vector<2x128xf32> to vector<2xf32>
    %403 = vector.shape_cast %402 : vector<2xf32> to vector<2x1xf32>
    %404 = vector.broadcast %403 : vector<2x1xf32> to vector<2x128xf32>
    %405 = arith.subf %400, %404 : vector<2x128xf32>
    %406 = math.exp %405 : vector<2x128xf32>
    %cst_169 = arith.constant dense<0.000000e+00> : vector<2xf32>
    %407 = vector.multi_reduction <add>, %406, %cst_169 [1] : vector<2x128xf32> to vector<2xf32>
    %408 = vector.shape_cast %407 : vector<2xf32> to vector<2x1xf32>
    %409 = math.log %408 : vector<2x1xf32>
    %410 = arith.addf %409, %403 : vector<2x1xf32>
    %c0_170 = arith.constant 0 : index
    %411 = memref.load %arg1[%c0_170] : memref<2xi32, #tpu.memory_space<smem>>
    %412 = vector.broadcast %411 : i32 to vector<1x1xi32>
    %c1_171 = arith.constant 1 : index
    %413 = memref.load %arg1[%c1_171] : memref<2xi32, #tpu.memory_space<smem>>
    %414 = vector.broadcast %413 : i32 to vector<1x1xi32>
    %415 = tpu.concatenate %412, %414 in 0 : vector<1x1xi32>, vector<1x1xi32> -> vector<2x1xi32>
    %416 = tpu.iota {dimensions = array<i32: 1>} : vector<2x128xi32>
    %417 = vector.broadcast %415 : vector<2x1xi32> to vector<2x128xi32>
    %418 = arith.cmpi eq, %416, %417 : vector<2x128xi32>
    %419 = arith.extui %418 : vector<2x128xi1> to vector<2x128xi32>
    %420 = arith.sitofp %419 : vector<2x128xi32> to vector<2x128xf32>
    %421 = vector.broadcast %410 : vector<2x1xf32> to vector<2x128xf32>
    %422 = arith.subf %421, %400 : vector<2x128xf32>
    %423 = arith.mulf %420, %422 : vector<2x128xf32>
    %424 = vector.shape_cast %423 : vector<2x128xf32> to vector<1x2x128xf32>
    %cst_172 = arith.constant dense<0.000000e+00> : vector<1xf32>
    %425 = vector.multi_reduction <add>, %424, %cst_172 [1, 2] : vector<1x2x128xf32> to vector<1xf32>
    %426 = vector.shape_cast %425 : vector<1xf32> to vector<1x1x1xf32>
    %427 = vector.extract %426[0, 0, 0] : f32 from vector<1x1x1xf32>
    %cst_173 = arith.constant 2.000000e+00 : f32
    %428 = arith.divf %427, %cst_173 : f32
    %c0_174 = arith.constant 0 : index
    %c0_175 = arith.constant 0 : index
    %429 = memref.load %arg21[%c0_174, %c0_175] : memref<1x1xf32, #tpu.memory_space<smem>>
    memref.store %428, %arg21[%c0_174, %c0_175] : memref<1x1xf32, #tpu.memory_space<smem>>
    return
  }
}

</mosaic_0001>

<bundles_post_ra>
// kernel: bert_forward.1
= control target key start
LH: loop header
LB: loop body
LE: loop exit
PB: predicated region body
PF: predicated region fallthrough
CT: control target
= control target key end

     0   :  { %s4445_s0 = inlined_call_operand.vmem [shape: f32[16,32], index: 0, kind: input, shape index: {}]   ;;  %s4446_s1 = inlined_call_operand.vmem [shape: s32[2], index: 1, kind: input, shape index: {}]   ;;  %s4447_s2 = inlined_call_operand.vmem [shape: f32[1,32], index: 2, kind: input, shape index: {}]   ;;  %s4448_s3 = inlined_call_operand.vmem [shape: f32[1,32], index: 3, kind: input, shape index: {}]   ;;  %s4449_s4 = inlined_call_operand.vmem [shape: bf16[2,32,96], index: 4, kind: input, shape index: {}]   ;;  %s4450_s5 = inlined_call_operand.vmem [shape: f32[2,1,96], index: 5, kind: input, shape index: {}]   ;;  %s4451_s6 = inlined_call_operand.vmem [shape: bf16[2,32,32], index: 6, kind: input, shape index: {}]   ;;  %s4452_s7 = inlined_call_operand.vmem [shape: f32[2,1,32], index: 7, kind: input, shape index: {}]   ;;  %s4453_s8 = inlined_call_operand.vmem [shape: f32[2,1,32], index: 8, kind: input, shape index: {}]   ;;  %s4454_s9 = inlined_call_operand.vmem [shape: f32[2,1,32], index: 9, kind: input, shape index: {}]   ;;  %s4455_s10 = inlined_call_operand.vmem [shape: bf16[2,32,64], index: 10, kind: input, shape index: {}]   ;;  %s4456_s11 = inlined_call_operand.vmem [shape: f32[2,1,64], index: 11, kind: input, shape index: {}]   ;;  %s4457_s12 = inlined_call_operand.vmem [shape: bf16[2,64,32], index: 12, kind: input, shape index: {}]   ;;  %s4458_s13 = inlined_call_operand.vmem [shape: f32[2,1,32], index: 13, kind: input, shape index: {}]   ;;  %s4459_s14 = inlined_call_operand.vmem [shape: f32[2,1,32], index: 14, kind: input, shape index: {}]   ;;  %s4460_s15 = inlined_call_operand.vmem [shape: f32[2,1,32], index: 15, kind: input, shape index: {}]   ;;  %s4461_s16 = inlined_call_operand.vmem [shape: bf16[32,32], index: 16, kind: input, shape index: {}]   ;;  %s4462_s17 = inlined_call_operand.vmem [shape: f32[1,32], index: 17, kind: input, shape index: {}]   ;;  %s4463_s18 = inlined_call_operand.vmem [shape: bf16[32,128], index: 18, kind: input, shape index: {}]   ;;  %s4464_s19 = inlined_call_operand.vmem [shape: f32[1,128], index: 19, kind: input, shape index: {}]   ;;  %s4465_s20 = inlined_call_operand.hbm [shape: f32[2,128], index: 20, kind: output, shape index: {0}]   ;;  %s4466_s21 = inlined_call_operand.hbm [shape: f32[1,1], index: 21, kind: output, shape index: {1}]  }
   0x1   :  { %4485 = sst [smem:[#allocation11_spill]] %s4445_s0 }
   0x2   :  { %4486 = sst [smem:[#allocation12_spill]] %s4446_s1 }
   0x3   :  { %4487 = sst [smem:[#allocation13_spill]] %s4447_s2 }
   0x4   :  { %4488 = sst [smem:[#allocation14_spill]] %s4448_s3 }
   0x5   :  { %4489 = sst [smem:[#allocation15_spill]] %s4449_s4 }
   0x6   :  { %4490 = sst [smem:[#allocation16_spill]] %s4450_s5 }
   0x7   :  { %27 = vsyncpa [#allocation5], 0 }
   0x8   :  { %28 = vsyncpa [#allocation3], 0 }
   0x9   :  { %29 = vsyncpa [#allocation4], 0  ;;  %s4491_s26 = sld [smem:[#allocation12_spill]] }
   0xf   :  { %s38_s27 = sshll.u32 %s4491_s26, 4  ;;  %s39_s27 = int_to_ptr.vmem [resolvable:$true] %s38_s27 }
  0x10   :  { %s3666_s3 = scalar_lea.vmem %s39_s27, 16  ;;  %p3671_p1 = scmp.lt.s32.totalorder %s39_s27, %s39_s27 }
  0x11   :  { %p3667_p0 = scmp.ne.s32.totalorder %s39_s27, %s3666_s3  ;;  %p3672_p2 = scmp.lt.s32.totalorder %s3666_s3, %s3666_s3 }
  0x13   :  { %p3673_p3 = por %p3672_p2, %p3671_p1 }
  0x15   :  { %p3674_p4 = pnand %p3673_p3, %p3667_p0 }
  0x17   :  { %3677 = shalt.err (!%p3674_p4)
}
  0x18   :  { %s3716_s28 = smov [#allocation2]  }
  0x19   :  { %41 = dma.vmem_to_smem %s39_s27, 16, %s3716_s28, [#allocation5]  }
  0x1a   :  { %3710 = dma.done.wait [#allocation5], 16  }
  0x1b   :  { %3711 = vsyncadd [#allocation5], 4294967280 }
  0x1c   :  { %81 = sfence }
  0x1d   :  { %s4492_s4 = sld [smem:[#allocation11_spill]]  ;;  %vm87_vm0 = vcmask 261120   ;;  %s4493_s1 = sld [smem:[#allocation15_spill]]  ;;  %v3717_v15 = vmov 0.0   ;;  %vm3718_vm1 = vmmov 0   ;;  %vm204_vm2 = vcmask 64512  }
  0x1e   :  { %3211 = vmatprep.subr.bf16.mxu0 %v3717_v15  ;;  %3215 = vmatprep.mubr.msk.bf16.mxu0 %vm3718_vm1, %v3717_v15  ;;  %s4494_s27 = sld [smem:[#allocation13_spill]]  ;;  %s4495_s29 = sld [smem:[#allocation14_spill]]  ;;  %vm331_vm3 = vcmask 1043456   ;;  %vm1115_vm4 = vcmask 130048   ;;  %vm1118_vm5 = vcmask 195584   ;;  %vm1361_vm6 = vcmask 523264  }
  0x1f   :  { %3219 = vmatprep.subr.bf16.mxu1 %v3717_v15  ;;  %3221 = vmatprep.mubr.msk.bf16.mxu1 %vm3718_vm1, %v3717_v15  ;;  %s4496_s30 = sld [smem:[#allocation16_spill]]  ;;  %s3719_s5 = smov 96   ;;  %vm2798_vm7 = vcmask 1041409   ;;  %vm2925_vm8 = vcmask 1041408   ;;  %vm2942_vm9 = vcmask 1040384  }
  0x20   :  { %s3720_s22 = smov 64   ;;  %s3721_s23 = smov 88  }
  0x21   :  { %s3722_s24 = smov 120   ;;  %s3723_s2 = smov 56  }
  0x22   :  { %s4483_s25 = smov 80   ;;  %s4481_s26 = smov 112  }
  0x23   :  { %v83_v0 = vld [vmem:[%s4492_s4] sm:$0xff]  ;;  %v84_v1 = vld [vmem:[%s4492_s4 + $0x8] sm:$0xff]  ;;  %s4477_s3 = smov 72   ;;  %s4474_s28 = smov 104  }
  0x24   :  { %v88_v2 = vsel %vm87_vm0, %v83_v0, 0.0  ;;  %v91_v3 = vsel %vm87_vm0, %v84_v1, 0.0  ;;  %v3544_v14 = vld [vmem:[%s4493_s1] sm:$0xff]   ;;  %v3545_v16 = vld [vmem:[%s4493_s1 + $0x8] sm:$0xff]   ;;  %s4471_s0 = smov 8   ;;  %s4470_s4 = smov 16  }
  0x25   :  { %89 = vadd.xlane.f32.xlu0 %v88_v2  ;;  %3212 = vmatpush3.bf16.msra.mxu0 %v3544_v14  ;;  %v2997_v25 = vld [vmem:[%s4494_s27] ss:$0 sm:$0xff]  ;;  %s4479_s27 = smov 48  }
  0x26   :  { %3213 = vmatprep.subr.bf16.mxu0 %v3717_v15  ;;  %v2998_v29 = vld [vmem:[%s4495_s29] ss:$0 sm:$0xff]  ;;  %s4472_s29 = smov 40  }
  0x27   :  { %v2999_v34 = vld [vmem:[%s4496_s30] ss:$0 sm:$0xff] }
  0x29   :  { %92 = vadd.xlane.f32.xlu0 %v91_v3  ;;  %3214 = vmatpush3.bf16.msra.mxu0 %v3545_v16 }
  0x2a   :  { %3225 = vmatprep.subr.bf16.mxu0 %v3717_v15 }
  0xb2   :  { %v90_v4 = vpop.xlane.xlu0 %89 }
  0xb3   :  { %v95_v5 = vmul.f32 0.03125, %v90_v4 }
  0xb5   :  { %v97_v6 = vsub.f32 %v83_v0, %v95_v5 }
  0xb6   :  { %v93_v7 = vpop.xlane.xlu0 %92 }
  0xb7   :  { %v96_v8 = vmul.f32 0.03125, %v93_v7  ;;  %v99_v9 = vmul.f32 %v97_v6, %v97_v6 }
  0xb9   :  { %v98_v10 = vsub.f32 %v84_v1, %v96_v8  ;;  %v101_v11 = vsel %vm87_vm0, %v99_v9, 0.0 }
  0xba   :  { %102 = vadd.xlane.f32.xlu1 %v101_v11 }
  0xbb   :  { %v100_v12 = vmul.f32 %v98_v10, %v98_v10 }
  0xbd   :  { %v104_v13 = vsel %vm87_vm0, %v100_v12, 0.0 }
  0xbe   :  { %105 = vadd.xlane.f32.xlu1 %v104_v13 }
 0x147   :  { %v103_v17 = vpop.xlane.xlu1 %102 }
 0x148   :  { %v107_v18 = vmul.f32 0.03125, %v103_v17 }
 0x14a   :  { %v109_v19 = vadd.f32 1e-12, %v107_v18 }
 0x14b   :  { %v106_v20 = vpop.xlane.xlu1 %105 }
 0x14c   :  { %3568 = vrsqrt.f32 %v109_v19  ;;  %v108_v21 = vmul.f32 0.03125, %v106_v20 }
 0x14e   :  { %v110_v22 = vadd.f32 1e-12, %v108_v21 }
 0x150   :  { %3570 = vrsqrt.f32 %v110_v22 }
 0x156   :  { %v3569_v23 = vpop.eup %3568 }
 0x157   :  { %v113_v24 = vmul.f32 %v3569_v23, %v97_v6 }
 0x159   :  { %v121_v28 = vmul.f32 %v2997_v25, %v113_v24 }
 0x15a   :  { %v3571_v26 = vpop.eup %3570 }
 0x15b   :  { %v114_v27 = vmul.f32 %v3571_v26, %v98_v10  ;;  %v3879_v31 = vadd.f32 %v2998_v29, %v121_v28 }
 0x15d   :  { %v122_v30 = vmul.f32 %v2997_v25, %v114_v27 }
 0x15f   :  { %v3881_v32 = vadd.f32 %v2998_v29, %v122_v30 }
 0x161   :  { %v135_v33 = vpack.c.bf16 %v3881_v32, %v3879_v31 }
 0x163   :  { %3216 = vmatmul.mubr.msk.bf16.vlgmr.msra.gmra.mrb[0].mxu0 %vm87_vm0, %v135_v33 }
 0x164   :  { %3227 = vmatprep.mubr.msk.bf16.mxu0 %vm3718_vm1, %v3717_v15 }
 0x236   :  { %v192_v35 = vpop.f32.mrb[0].mxu0 }
 0x237   :  { %v193_v36 = vadd.f32 %v2999_v34, %v192_v35  ;;  %v3217_v37 = vpop.f32.mrb[1].mxu0 }
 0x238   :  { %v195_v38 = vpop.f32.mrb[2].mxu0 }
 0x239   :  { %v3891_v39 = vpack.c.bf16 %v193_v36, %v193_v36  ;;  %v196_v40 = vadd.f32 %v2999_v34, %v195_v38  ;;  %v3218_v41 = vpop.f32.mrb[3].mxu0 }
 0x23b   :  { %v3893_v42 = vpack.c.bf16 %v196_v40, %v196_v40  ;;  %202 = vrot.lane.b32.xlu0 %v3891_v39, %s3719_s5 }
 0x23d   :  { %252 = vrot.lane.b32.xlu1 %v3893_v42, %s3719_s5 }
 0x2ad   :  { %v203_v43 = vpop.permute.xlu0 %202 }
 0x2ae   :  { %v209_v44 = vsel %vm204_vm2, %v203_v43, 0 }
 0x2af   :  { %3220 = vmatpush3.bf16.xpose.msra.mxu1 %v209_v44  ;;  %v253_v45 = vpop.permute.xlu1 %252 }
 0x2b0   :  { %v258_v46 = vsel %vm204_vm2, %v253_v45, 0  ;;  %3231 = vmatprep.subr.bf16.mxu1 %v3717_v15 }
 0x2b1   :  { %3226 = vmatpush3.bf16.xpose.msra.mxu0 %v258_v46 }
 0x2b2   :  { %3237 = vmatprep.subr.bf16.mxu0 %v3717_v15 }
 0x2b6   :  { %3222 = vmatmul.mubr.msk.bf16.vlgmr.msra.gmra.mrb[0].mxu1 %vm204_vm2, %v3891_v39 }
 0x2b7   :  { %3233 = vmatprep.mubr.msk.bf16.mxu1 %vm3718_vm1, %v3717_v15 }
 0x2b8   :  { %3228 = vmatmul.mubr.msk.bf16.vlgmr.msra.gmra.mrb[4].mxu0 %vm204_vm2, %v3893_v42 }
 0x2b9   :  { %3239 = vmatprep.mubr.msk.bf16.mxu0 %vm3718_vm1, %v3717_v15 }
 0x389   :  { %v245_v47 = vpop.f32.mrb[0].mxu1 }
 0x38a   :  { %v300_v48 = vmul.f32 0.35355338, %v245_v47  ;;  %v3223_v49 = vpop.f32.mrb[1].mxu1 }
 0x38b   :  { %v248_v50 = vpop.f32.mrb[2].mxu1  ;;  %v294_v51 = vpop.f32.mrb[4].mxu0 }
 0x38c   :  { %v301_v52 = vmul.f32 0.35355338, %v294_v51  ;;  %v3224_v53 = vpop.f32.mrb[3].mxu1  ;;  %v3229_v54 = vpop.f32.mrb[5].mxu0  ;;  %v302_v55 = vsel %vm204_vm2, %v300_v48, -inf }
 0x38d   :  { %303 = vmax.xlane.f32.xlu1 %v302_v55  ;;  %v297_v56 = vpop.f32.mrb[6].mxu0 }
 0x38e   :  { %v3230_v57 = vpop.f32.mrb[7].mxu0  ;;  %v305_v58 = vsel %vm204_vm2, %v301_v52, -inf }
 0x38f   :  { %306 = vmax.xlane.f32.xlu0 %v305_v58 }
 0x39e   :  { %375 = vrot.lane.b32.xlu1 %v3893_v42, %s3720_s22 }
 0x3a2   :  { %425 = vrot.lane.b32.xlu1 %v3891_v39, %s3721_s23 }
 0x41a   :  { %v304_v59 = vpop.xlane.xlu1 %303 }
 0x41b   :  { %v308_v60 = vsub.f32 %v300_v48, %v304_v59 }
 0x41c   :  { %v307_v61 = vpop.xlane.xlu0 %306 }
 0x41d   :  { %v310_v62 = vmul.f32 1.442695, %v308_v60  ;;  %v309_v63 = vsub.f32 %v301_v52, %v307_v61 }
 0x41e   :  { %v376_v0 = vpop.permute.xlu1 %375 }
 0x41f   :  { %3572 = vpow2.f32 %v310_v62  ;;  %v312_v1 = vmul.f32 1.442695, %v309_v63  ;;  %v381_v2 = vsel %vm331_vm3, %v376_v0, 0 }
 0x420   :  { %3238 = vmatpush3.bf16.msra.mxu0 %v381_v2 }
 0x421   :  { %3574 = vpow2.f32 %v312_v1  ;;  %3249 = vmatprep.subr.bf16.mxu0 %v3717_v15 }
 0x422   :  { %v426_v7 = vpop.permute.xlu1 %425 }
 0x423   :  { %v431_v19 = vsel %vm204_vm2, %v426_v7, 0 }
 0x429   :  { %v3573_v3 = vpop.eup %3572 }
 0x42a   :  { %v314_v4 = vsel %vm204_vm2, %v3573_v3, 0.0 }
 0x42b   :  { %v3575_v5 = vpop.eup %3574  ;;  %315 = vadd.xlane.f32.xlu0 %v314_v4 }
 0x42c   :  { %v317_v6 = vsel %vm204_vm2, %v3575_v5, 0.0 }
 0x42d   :  { %318 = vadd.xlane.f32.xlu1 %v317_v6 }
 0x43e   :  { %475 = vrot.lane.b32.xlu1 %v3893_v42, %s3721_s23 }
 0x441   :  { %326 = vrot.lane.b32.xlu0 %v3891_v39, %s3720_s22 }
 0x442   :  { %473 = vrot.lane.b32.xlu1 %v3893_v42, %s3722_s24 }
 0x445   :  { %423 = vrot.lane.b32.xlu0 %v3891_v39, %s3722_s24 }
 0x4b8   :  { %v316_v8 = vpop.xlane.xlu0 %315 }
 0x4b9   :  { %3576 = vrcp.f32 %v316_v8 }
 0x4ba   :  { %v319_v9 = vpop.xlane.xlu1 %318 }
 0x4bb   :  { %3578 = vrcp.f32 %v319_v9 }
 0x4bc   :  { %v327_v10 = vpop.permute.xlu0 %326 }
 0x4bd   :  { %v333_v11 = vsel %vm331_vm3, %v327_v10, 0 }
 0x4be   :  { %3232 = vmatpush3.bf16.msra.mxu1 %v333_v11  ;;  %v476_v18 = vpop.permute.xlu1 %475 }
 0x4bf   :  { %3243 = vmatprep.subr.bf16.mxu1 %v3717_v15  ;;  %v481_v21 = vsel %vm204_vm2, %v476_v18, 0 }
 0x4c0   :  { %v424_v22 = vpop.permute.xlu0 %423 }
 0x4c2   :  { %v474_v23 = vpop.permute.xlu1 %473 }
 0x4c3   :  { %v3577_v12 = vpop.eup %3576 }
 0x4c4   :  { %v322_v13 = vmul.f32 %v3577_v12, %v3573_v3 }
 0x4c5   :  { %v3579_v14 = vpop.eup %3578 }
 0x4c6   :  { %v323_v16 = vmul.f32 %v3579_v14, %v3575_v5  ;;  %v324_v17 = vpack.c.bf16 %v322_v13, %v322_v13 }
 0x4c8   :  { %3234 = vmatmul.mubr.msk.bf16.vlgmr.msra.gmra.mrb[4].mxu1 %vm204_vm2, %v324_v17  ;;  %v325_v20 = vpack.c.bf16 %v323_v16, %v323_v16 }
 0x4c9   :  { %3244 = vmatpush3.bf16.xpose.msra.mxu1 %v431_v19  ;;  %3245 = vmatprep.mubr.msk.bf16.mxu1 %vm3718_vm1, %v3717_v15 }
 0x4ca   :  { %3240 = vmatmul.mubr.msk.bf16.vlgmr.msra.gmra.mrb[8].mxu0 %vm204_vm2, %v325_v20  ;;  %3255 = vmatprep.subr.bf16.mxu1 %v3717_v15 }
 0x4cb   :  { %3250 = vmatpush3.bf16.xpose.msra.mxu0 %v481_v21  ;;  %3251 = vmatprep.mubr.msk.bf16.mxu0 %vm3718_vm1, %v3717_v15 }
 0x4cc   :  { %3261 = vmatprep.subr.bf16.mxu0 %v3717_v15 }
 0x4d0   :  { %3246 = vmatmul.mubr.msk.bf16.vlgmr.msra.gmra.mrb[8].mxu1 %vm204_vm2, %v424_v22 }
 0x4d1   :  { %3257 = vmatprep.mubr.msk.bf16.mxu1 %vm3718_vm1, %v3717_v15 }
 0x4d2   :  { %3252 = vmatmul.mubr.msk.bf16.vlgmr.msra.gmra.mrb[12].mxu0 %vm204_vm2, %v474_v23 }
 0x4d3   :  { %3263 = vmatprep.mubr.msk.bf16.mxu0 %vm3718_vm1, %v3717_v15 }
 0x59b   :  { %v3947_v24 = vpop.f32.mrb[4].mxu1 }
 0x59c   :  { %v3235_v25 = vpop.f32.mrb[5].mxu1 }
 0x59d   :  { %v372_v26 = vpop.f32.mrb[6].mxu1  ;;  %v3949_v27 = vpop.f32.mrb[8].mxu0 }
 0x59e   :  { %v3236_v28 = vpop.f32.mrb[7].mxu1  ;;  %v3241_v29 = vpop.f32.mrb[9].mxu0 }
 0x59f   :  { %v420_v30 = vpop.f32.mrb[10].mxu0 }
 0x5a0   :  { %v3242_v33 = vpop.f32.mrb[11].mxu0 }
 0x5a3   :  { %v467_v34 = vpop.f32.mrb[8].mxu1 }
 0x5a4   :  { %v523_v35 = vmul.f32 0.35355338, %v467_v34  ;;  %v3247_v36 = vpop.f32.mrb[9].mxu1 }
 0x5a5   :  { %v470_v37 = vpop.f32.mrb[10].mxu1  ;;  %v517_v38 = vpop.f32.mrb[12].mxu0 }
 0x5a6   :  { %v524_v40 = vmul.f32 0.35355338, %v517_v38  ;;  %v3248_v41 = vpop.f32.mrb[11].mxu1  ;;  %v3253_v43 = vpop.f32.mrb[13].mxu0  ;;  %v525_v44 = vsel %vm204_vm2, %v523_v35, -inf }
 0x5a7   :  { %526 = vmax.xlane.f32.xlu0 %v525_v44  ;;  %v520_v45 = vpop.f32.mrb[14].mxu0 }
 0x5a8   :  { %v3254_v46 = vpop.f32.mrb[15].mxu0  ;;  %v528_v47 = vsel %vm204_vm2, %v524_v40, -inf }
 0x5a9   :  { %529 = vmax.xlane.f32.xlu1 %v528_v47 }
 0x5ba   :  { %597 = vrot.lane.b32.xlu1 %v3893_v42, %s3723_s2 }
 0x5be   :  { %647 = vrot.lane.b32.xlu1 %v3891_v39, %s4483_s25 }
 0x5c2   :  { %697 = vrot.lane.b32.xlu1 %v3893_v42, %s4483_s25  ;;  %s4505_s25 = smov 24  }
 0x5c6   :  { %695 = vrot.lane.b32.xlu1 %v3893_v42, %s4481_s26 }
 0x634   :  { %v527_v48 = vpop.xlane.xlu0 %526 }
 0x635   :  { %v531_v49 = vsub.f32 %v523_v35, %v527_v48 }
 0x636   :  { %v530_v50 = vpop.xlane.xlu1 %529 }
 0x637   :  { %v533_v51 = vmul.f32 1.442695, %v531_v49  ;;  %v532_v52 = vsub.f32 %v524_v40, %v530_v50 }
 0x639   :  { %3580 = vpow2.f32 %v533_v51  ;;  %v535_v53 = vmul.f32 1.442695, %v532_v52 }
 0x63a   :  { %v598_v54 = vpop.permute.xlu1 %597 }
 0x63b   :  { %3582 = vpow2.f32 %v535_v53  ;;  %v603_v55 = vsel %vm331_vm3, %v598_v54, 0 }
 0x63c   :  { %3262 = vmatpush3.bf16.msra.mxu0 %v603_v55 }
 0x63d   :  { %3273 = vmatprep.subr.bf16.mxu0 %v3717_v15 }
 0x63e   :  { %v648_v1 = vpop.permute.xlu1 %647 }
 0x63f   :  { %v653_v7 = vsel %vm204_vm2, %v648_v1, 0 }
 0x642   :  { %v698_v6 = vpop.permute.xlu1 %697 }
 0x643   :  { %v3581_v56 = vpop.eup %3580  ;;  %v703_v9 = vsel %vm204_vm2, %v698_v6, 0 }
 0x644   :  { %v537_v57 = vsel %vm204_vm2, %v3581_v56, 0.0 }
 0x645   :  { %v3583_v58 = vpop.eup %3582  ;;  %538 = vadd.xlane.f32.xlu0 %v537_v57 }
 0x646   :  { %v540_v59 = vsel %vm204_vm2, %v3583_v58, 0.0  ;;  %v696_v11 = vpop.permute.xlu1 %695 }
 0x649   :  { %541 = vadd.xlane.f32.xlu0 %v540_v59 }
 0x65f   :  { %549 = vrot.lane.b32.xlu0 %v3891_v39, %s3723_s2 }
 0x663   :  { %645 = vrot.lane.b32.xlu0 %v3891_v39, %s4481_s26 }
 0x6d2   :  { %v539_v60 = vpop.xlane.xlu0 %538 }
 0x6d3   :  { %3584 = vrcp.f32 %v539_v60 }
 0x6d6   :  { %v542_v61 = vpop.xlane.xlu0 %541 }
 0x6d7   :  { %3586 = vrcp.f32 %v542_v61 }
 0x6da   :  { %v550_v62 = vpop.permute.xlu0 %549 }
 0x6db   :  { %v555_v63 = vsel %vm331_vm3, %v550_v62, 0 }
 0x6dc   :  { %3256 = vmatpush3.bf16.msra.mxu1 %v555_v63 }
 0x6dd   :  { %v3585_v0 = vpop.eup %3584  ;;  %3267 = vmatprep.subr.bf16.mxu1 %v3717_v15 }
 0x6de   :  { %v545_v2 = vmul.f32 %v3585_v0, %v3581_v56  ;;  %v646_v10 = vpop.permute.xlu0 %645 }
 0x6e0   :  { %v547_v3 = vpack.c.bf16 %v545_v2, %v545_v2 }
 0x6e1   :  { %v3587_v4 = vpop.eup %3586 }
 0x6e2   :  { %v546_v5 = vmul.f32 %v3587_v4, %v3583_v58  ;;  %3258 = vmatmul.mubr.msk.bf16.vlgmr.msra.gmra.mrb[12].mxu1 %vm204_vm2, %v547_v3 }
 0x6e3   :  { %3269 = vmatprep.mubr.msk.bf16.mxu1 %vm3718_vm1, %v3717_v15 }
 0x6e4   :  { %v548_v8 = vpack.c.bf16 %v546_v5, %v546_v5 }
 0x6e5   :  { %3268 = vmatpush3.bf16.xpose.msra.mxu1 %v653_v7 }
 0x6e6   :  { %3264 = vmatmul.mubr.msk.bf16.vlgmr.msra.gmra.mrb[16].mxu0 %vm204_vm2, %v548_v8  ;;  %3279 = vmatprep.subr.bf16.mxu1 %v3717_v15 }
 0x6e7   :  { %3274 = vmatpush3.bf16.xpose.msra.mxu0 %v703_v9  ;;  %3275 = vmatprep.mubr.msk.bf16.mxu0 %vm3718_vm1, %v3717_v15 }
 0x6e8   :  { %3285 = vmatprep.subr.bf16.mxu0 %v3717_v15 }
 0x6ec   :  { %3270 = vmatmul.mubr.msk.bf16.vlgmr.msra.gmra.mrb[16].mxu1 %vm204_vm2, %v646_v10 }
 0x6ed   :  { %3281 = vmatprep.mubr.msk.bf16.mxu1 %vm3718_vm1, %v3717_v15 }
 0x6ee   :  { %3276 = vmatmul.mubr.msk.bf16.vlgmr.msra.gmra.mrb[20].mxu0 %vm204_vm2, %v696_v11 }
 0x6ef   :  { %3287 = vmatprep.mubr.msk.bf16.mxu0 %vm3718_vm1, %v3717_v15 }
 0x7b5   :  { %v3987_v12 = vpop.f32.mrb[12].mxu1 }
 0x7b6   :  { %v3259_v13 = vpop.f32.mrb[13].mxu1 }
 0x7b7   :  { %v594_v14 = vpop.f32.mrb[14].mxu1 }
 0x7b8   :  { %v3260_v16 = vpop.f32.mrb[15].mxu1 }
 0x7b9   :  { %v3989_v17 = vpop.f32.mrb[16].mxu0 }
 0x7ba   :  { %v3513_v18 = vpack.i.bf16 %v3989_v17, %v3987_v12  ;;  %v3265_v19 = vpop.f32.mrb[17].mxu0 }
 0x7bb   :  { %v642_v20 = vpop.f32.mrb[18].mxu0 }
 0x7bc   :  { %v3266_v21 = vpop.f32.mrb[19].mxu0 }
 0x7bf   :  { %v689_v22 = vpop.f32.mrb[16].mxu1 }
 0x7c0   :  { %v745_v23 = vmul.f32 0.35355338, %v689_v22  ;;  %v3271_v25 = vpop.f32.mrb[17].mxu1 }
 0x7c1   :  { %v692_v26 = vpop.f32.mrb[18].mxu1  ;;  %v739_v28 = vpop.f32.mrb[20].mxu0 }
 0x7c2   :  { %v746_v29 = vmul.f32 0.35355338, %v739_v28  ;;  %v3272_v30 = vpop.f32.mrb[19].mxu1  ;;  %v3277_v33 = vpop.f32.mrb[21].mxu0  ;;  %v747_v34 = vsel %vm204_vm2, %v745_v23, -inf }
 0x7c3   :  { %748 = vmax.xlane.f32.xlu0 %v747_v34  ;;  %v742_v35 = vpop.f32.mrb[22].mxu0 }
 0x7c4   :  { %v3278_v36 = vpop.f32.mrb[23].mxu0  ;;  %v750_v37 = vsel %vm204_vm2, %v746_v29, -inf }
 0x7c5   :  { %751 = vmax.xlane.f32.xlu1 %v750_v37 }
 0x7d6   :  { %819 = vrot.lane.b32.xlu1 %v3893_v42, %s4479_s27 }
 0x7da   :  { %869 = vrot.lane.b32.xlu1 %v3891_v39, %s4477_s3 }
 0x7de   :  { %919 = vrot.lane.b32.xlu1 %v3893_v42, %s4477_s3 }
 0x7e2   :  { %917 = vrot.lane.b32.xlu1 %v3893_v42, %s4474_s28 }
 0x850   :  { %v749_v38 = vpop.xlane.xlu0 %748 }
 0x851   :  { %v753_v40 = vsub.f32 %v745_v23, %v749_v38 }
 0x852   :  { %v752_v41 = vpop.xlane.xlu1 %751 }
 0x853   :  { %v755_v43 = vmul.f32 1.442695, %v753_v40  ;;  %v754_v44 = vsub.f32 %v746_v29, %v752_v41 }
 0x855   :  { %3588 = vpow2.f32 %v755_v43  ;;  %v757_v45 = vmul.f32 1.442695, %v754_v44 }
 0x856   :  { %v820_v46 = vpop.permute.xlu1 %819 }
 0x857   :  { %3590 = vpow2.f32 %v757_v45  ;;  %v825_v47 = vsel %vm331_vm3, %v820_v46, 0 }
 0x858   :  { %3286 = vmatpush3.bf16.msra.mxu0 %v825_v47 }
 0x859   :  { %3297 = vmatprep.subr.bf16.mxu0 %v3717_v15 }
 0x85a   :  { %v870_v57 = vpop.permute.xlu1 %869 }
 0x85b   :  { %v875_v63 = vsel %vm204_vm2, %v870_v57, 0 }
 0x85e   :  { %v920_v62 = vpop.permute.xlu1 %919 }
 0x85f   :  { %v3589_v48 = vpop.eup %3588  ;;  %v925_v1 = vsel %vm204_vm2, %v920_v62, 0 }
 0x860   :  { %v759_v49 = vsel %vm204_vm2, %v3589_v48, 0.0 }
 0x861   :  { %v3591_v50 = vpop.eup %3590  ;;  %760 = vadd.xlane.f32.xlu0 %v759_v49 }
 0x862   :  { %v762_v51 = vsel %vm204_vm2, %v3591_v50, 0.0  ;;  %v918_v3 = vpop.permute.xlu1 %917 }
 0x865   :  { %763 = vadd.xlane.f32.xlu0 %v762_v51 }
 0x87b   :  { %771 = vrot.lane.b32.xlu0 %v3891_v39, %s4479_s27 }
 0x87f   :  { %867 = vrot.lane.b32.xlu0 %v3891_v39, %s4474_s28  ;;  %s4503_s28 = smov 8  }
 0x8ee   :  { %v761_v52 = vpop.xlane.xlu0 %760 }
 0x8ef   :  { %3592 = vrcp.f32 %v761_v52  ;;  %v3546_v52 = vld [vmem:[%s4451_s6] sm:$0xff]  }
 0x8f2   :  { %v764_v53 = vpop.xlane.xlu0 %763 }
 0x8f3   :  { %3594 = vrcp.f32 %v764_v53  ;;  %v3547_v53 = vld [vmem:[%s4451_s6 + $0x8] sm:$0xff]  }
 0x8f6   :  { %v772_v54 = vpop.permute.xlu0 %771 }
 0x8f7   :  { %v777_v55 = vsel %vm331_vm3, %v772_v54, 0 }
 0x8f8   :  { %3280 = vmatpush3.bf16.msra.mxu1 %v777_v55 }
 0x8f9   :  { %v3593_v56 = vpop.eup %3592  ;;  %3291 = vmatprep.subr.bf16.mxu1 %v3717_v15 }
 0x8fa   :  { %v767_v58 = vmul.f32 %v3593_v56, %v3589_v48  ;;  %v868_v2 = vpop.permute.xlu0 %867 }
 0x8fc   :  { %v769_v59 = vpack.c.bf16 %v767_v58, %v767_v58 }
 0x8fd   :  { %v3595_v60 = vpop.eup %3594 }
 0x8fe   :  { %v768_v61 = vmul.f32 %v3595_v60, %v3591_v50  ;;  %3282 = vmatmul.mubr.msk.bf16.vlgmr.msra.gmra.mrb[20].mxu1 %vm204_vm2, %v769_v59 }
 0x8ff   :  { %3293 = vmatprep.mubr.msk.bf16.mxu1 %vm3718_vm1, %v3717_v15 }
 0x900   :  { %v770_v0 = vpack.c.bf16 %v768_v61, %v768_v61 }
 0x901   :  { %3292 = vmatpush3.bf16.xpose.msra.mxu1 %v875_v63 }
 0x902   :  { %3288 = vmatmul.mubr.msk.bf16.vlgmr.msra.gmra.mrb[24].mxu0 %vm204_vm2, %v770_v0  ;;  %3303 = vmatprep.subr.bf16.mxu1 %v3717_v15 }
 0x903   :  { %3298 = vmatpush3.bf16.xpose.msra.mxu0 %v925_v1  ;;  %3299 = vmatprep.mubr.msk.bf16.mxu0 %vm3718_vm1, %v3717_v15 }
 0x904   :  { %3309 = vmatprep.subr.bf16.mxu0 %v3717_v15 }
 0x908   :  { %3294 = vmatmul.mubr.msk.bf16.vlgmr.msra.gmra.mrb[24].mxu1 %vm204_vm2, %v868_v2 }
 0x909   :  { %3305 = vmatprep.mubr.msk.bf16.mxu1 %vm3718_vm1, %v3717_v15 }
 0x90a   :  { %3300 = vmatmul.mubr.msk.bf16.vlgmr.msra.gmra.mrb[28].mxu0 %vm204_vm2, %v918_v3 }
 0x90b   :  { %3311 = vmatprep.mubr.msk.bf16.mxu0 %vm3718_vm1, %v3717_v15 }
 0x9d1   :  { %v813_v4 = vpop.f32.mrb[20].mxu1 }
 0x9d2   :  { %v3283_v5 = vpop.f32.mrb[21].mxu1 }
 0x9d3   :  { %v816_v6 = vpop.f32.mrb[22].mxu1 }
 0x9d4   :  { %v3284_v7 = vpop.f32.mrb[23].mxu1 }
 0x9d5   :  { %v861_v8 = vpop.f32.mrb[24].mxu0 }
 0x9d6   :  { %v3518_v9 = vpack.i.bf16 %v861_v8, %v813_v4  ;;  %v3289_v10 = vpop.f32.mrb[25].mxu0 }
 0x9d7   :  { %v864_v11 = vpop.f32.mrb[26].mxu0 }
 0x9d8   :  { %v3290_v13 = vpop.f32.mrb[27].mxu0 }
 0x9db   :  { %v911_v14 = vpop.f32.mrb[24].mxu1 }
 0x9dc   :  { %v967_v16 = vmul.f32 0.35355338, %v911_v14  ;;  %v3295_v19 = vpop.f32.mrb[25].mxu1 }
 0x9dd   :  { %v914_v20 = vpop.f32.mrb[26].mxu1  ;;  %v961_v21 = vpop.f32.mrb[28].mxu0 }
 0x9de   :  { %v968_v22 = vmul.f32 0.35355338, %v961_v21  ;;  %v3296_v23 = vpop.f32.mrb[27].mxu1  ;;  %v3301_v25 = vpop.f32.mrb[29].mxu0  ;;  %v969_v26 = vsel %vm204_vm2, %v967_v16, -inf }
 0x9df   :  { %970 = vmax.xlane.f32.xlu0 %v969_v26  ;;  %v964_v28 = vpop.f32.mrb[30].mxu0 }
 0x9e0   :  { %v3302_v29 = vpop.f32.mrb[31].mxu0  ;;  %v972_v30 = vsel %vm204_vm2, %v968_v22, -inf }
 0x9e1   :  { %973 = vmax.xlane.f32.xlu1 %v972_v30 }
 0x9f2   :  { %1041 = vrot.lane.b32.xlu1 %v3893_v42, %s4472_s29 }
 0x9f6   :  { %3514 = vrot.lane.b32.xlu1 %v3513_v18, %s4471_s0  ;;  %s4476_s0 = smov 24  }
 0x9fa   :  { %3519 = vrot.lane.b32.xlu1 %v3518_v9, %s4470_s4 }
 0xa6c   :  { %v971_v33 = vpop.xlane.xlu0 %970 }
 0xa6d   :  { %v975_v34 = vsub.f32 %v967_v16, %v971_v33 }
 0xa6e   :  { %v974_v35 = vpop.xlane.xlu1 %973 }
 0xa6f   :  { %v977_v36 = vmul.f32 1.442695, %v975_v34  ;;  %v976_v37 = vsub.f32 %v968_v22, %v974_v35 }
 0xa71   :  { %3596 = vpow2.f32 %v977_v36  ;;  %v979_v38 = vmul.f32 1.442695, %v976_v37 }
 0xa72   :  { %v1042_v40 = vpop.permute.xlu1 %1041 }
 0xa73   :  { %3598 = vpow2.f32 %v979_v38  ;;  %v1047_v42 = vsel %vm331_vm3, %v1042_v40, 0 }
 0xa74   :  { %3310 = vmatpush3.bf16.msra.mxu0 %v1047_v42 }
 0xa75   :  { %3323 = vmatprep.subr.bf16.mxu0 %v3717_v15 }
 0xa76   :  { %v3515_v63 = vpop.permute.xlu1 %3514 }
 0xa77   :  { %v3517_v1 = vunpack.i.h.bf16 %v3515_v63  ;;  %v3516_v2 = vunpack.i.l.bf16 %v3515_v63 }
 0xa79   :  { %v1114_v6 = vsel %vm204_vm2, %v3949_v27, %v3517_v1  ;;  %v1113_v7 = vsel %vm204_vm2, %v3947_v24, %v3516_v2  ;;  %v3019_v24 = vld [vmem:[%s4452_s7] ss:$0 sm:$0xff] }
 0xa7a   :  { %v3520_v0 = vpop.permute.xlu1 %3519 }
 0xa7b   :  { %v3597_v41 = vpop.eup %3596  ;;  %v3522_v3 = vunpack.i.h.bf16 %v3520_v0  ;;  %v3521_v4 = vunpack.i.l.bf16 %v3520_v0 }
 0xa7c   :  { %v981_v12 = vsel %vm204_vm2, %v3597_v41, 0.0 }
 0xa7d   :  { %v3599_v17 = vpop.eup %3598  ;;  %982 = vadd.xlane.f32.xlu0 %v981_v12  ;;  %v1116_v10 = vsel %vm1115_vm4, %v1113_v7, %v3521_v4  ;;  %v1117_v11 = vsel %vm1115_vm4, %v1114_v6, %v3522_v3 }
 0xa7e   :  { %v984_v18 = vsel %vm204_vm2, %v3599_v17, 0.0 }
 0xa81   :  { %985 = vadd.xlane.f32.xlu0 %v984_v18 }
 0xa97   :  { %993 = vrot.lane.b32.xlu0 %v3891_v39, %s4472_s29 }
 0xb0a   :  { %v983_v43 = vpop.xlane.xlu0 %982 }
 0xb0b   :  { %3600 = vrcp.f32 %v983_v43 }
 0xb0e   :  { %v986_v44 = vpop.xlane.xlu0 %985 }
 0xb0f   :  { %3602 = vrcp.f32 %v986_v44 }
 0xb12   :  { %v994_v45 = vpop.permute.xlu0 %993 }
 0xb13   :  { %v999_v46 = vsel %vm331_vm3, %v994_v45, 0 }
 0xb14   :  { %3304 = vmatpush3.bf16.msra.mxu1 %v999_v46 }
 0xb15   :  { %v3601_v47 = vpop.eup %3600  ;;  %3315 = vmatprep.subr.bf16.mxu1 %v3717_v15 }
 0xb16   :  { %v989_v48 = vmul.f32 %v3601_v47, %v3597_v41  ;;  %v3549_v41 = vld [vmem:[%s4455_s10 + $0x8] sm:$0xff]  }
 0xb18   :  { %v991_v49 = vpack.c.bf16 %v989_v48, %v989_v48  ;;  %v3023_v48 = vld [vmem:[%s4453_s8] ss:$0 sm:$0xff] }
 0xb19   :  { %v3603_v50 = vpop.eup %3602 }
 0xb1a   :  { %v990_v51 = vmul.f32 %v3603_v50, %v3599_v17  ;;  %3306 = vmatmul.mubr.msk.bf16.vlgmr.msra.gmra.mrb[28].mxu1 %vm204_vm2, %v991_v49 }
 0xb1b   :  { %3319 = vmatprep.mubr.msk.bf16.mxu1 %vm3718_vm1, %v3717_v15  ;;  %3316 = vmatpush3.bf16.msra.mxu1 %v3546_v52 }
 0xb1c   :  { %v992_v39 = vpack.c.bf16 %v990_v51, %v990_v51  ;;  %3317 = vmatprep.subr.bf16.mxu1 %v3717_v15 }
 0xb1e   :  { %3312 = vmatmul.mubr.msk.bf16.vlgmr.msra.gmra.mrb[32].mxu0 %vm204_vm2, %v992_v39  ;;  %v3024_v39 = vld [vmem:[%s4454_s9] ss:$0 sm:$0xff] }
 0xb1f   :  { %3327 = vmatprep.mubr.msk.bf16.mxu0 %vm3718_vm1, %v3717_v15  ;;  %3318 = vmatpush3.bf16.msra.mxu1 %v3547_v53 }
 0xb20   :  { %3331 = vmatprep.subr.bf16.mxu1 %v3717_v15 }
 0xbed   :  { %v1035_v54 = vpop.f32.mrb[28].mxu1 }
 0xbee   :  { %v3307_v55 = vpop.f32.mrb[29].mxu1 }
 0xbef   :  { %v1038_v56 = vpop.f32.mrb[30].mxu1 }
 0xbf0   :  { %v3308_v57 = vpop.f32.mrb[31].mxu1  ;;  %v3550_v56 = vld [vmem:[%s4457_s12] sm:$0xff]  }
 0xbf1   :  { %v1083_v58 = vpop.f32.mrb[32].mxu0  ;;  %v3551_v57 = vld [vmem:[%s4457_s12 + $0x8] sm:$0xff]  }
 0xbf2   :  { %v3523_v59 = vpack.i.bf16 %v1083_v58, %v1035_v54  ;;  %v3313_v60 = vpop.f32.mrb[33].mxu0  ;;  %v3552_v58 = vld [vmem:[%s4457_s12 + $0x10] sm:$0xff]  }
 0xbf3   :  { %v1086_v61 = vpop.f32.mrb[34].mxu0  ;;  %v3025_v60 = vld [vmem:[%s4456_s11] ss:$0 sm:$0xff] }
 0xbf4   :  { %3524 = vrot.lane.b32.xlu0 %v3523_v59, %s4476_s0  ;;  %v3314_v62 = vpop.f32.mrb[35].mxu0  ;;  %v3553_v59 = vld [vmem:[%s4457_s12 + $0x18] sm:$0xff]   ;;  %s4504_s0 = smov 16  }
 0xc66   :  { %v3525_v5 = vpop.permute.xlu0 %3524 }
 0xc67   :  { %v3527_v8 = vunpack.i.h.bf16 %v3525_v5  ;;  %v3526_v9 = vunpack.i.l.bf16 %v3525_v5 }
 0xc69   :  { %v1120_v13 = vsel %vm1118_vm5, %v1117_v11, %v3527_v8  ;;  %v1119_v14 = vsel %vm1118_vm5, %v1116_v10, %v3526_v9 }
 0xc6a   :  { %v1125_v16 = vpack.c.bf16 %v1120_v13, %v1119_v14 }
 0xc6c   :  { %3320 = vmatmul.mubr.msk.bf16.vlgmr.msra.gmra.mrb[32].mxu1 %vm87_vm0, %v1125_v16 }
 0xc6d   :  { %3339 = vmatprep.mubr.msk.bf16.mxu1 %vm3718_vm1, %v3717_v15  ;;  %3332 = vmatpush3.bf16.msra.mxu1 %v3550_v56 }
 0xc6e   :  { %3333 = vmatprep.subr.bf16.mxu1 %v3717_v15 }
 0xc71   :  { %3334 = vmatpush3.bf16.msra.mxu1 %v3551_v57 }
 0xc72   :  { %3335 = vmatprep.subr.bf16.mxu1 %v3717_v15 }
 0xc75   :  { %3336 = vmatpush3.bf16.msra.mxu1 %v3552_v58  ;;  %v3036_v58 = vld [vmem:[%s4460_s15] ss:$0 sm:$0xff] }
 0xc76   :  { %3337 = vmatprep.subr.bf16.mxu1 %v3717_v15 }
 0xc79   :  { %3338 = vmatpush3.bf16.msra.mxu1 %v3553_v59 }
 0xc7a   :  { %3357 = vmatprep.subr.bf16.mxu1 %v3717_v15 }
 0xd3f   :  { %v1182_v27 = vpop.f32.mrb[32].mxu1 }
 0xd40   :  { %v1183_v19 = vadd.f32 %v3019_v24, %v1182_v27  ;;  %v3321_v20 = vpop.f32.mrb[33].mxu1 }
 0xd41   :  { %v1185_v21 = vpop.f32.mrb[34].mxu1 }
 0xd42   :  { %v1186_v22 = vadd.f32 %v3019_v24, %v1185_v21  ;;  %v3322_v23 = vpop.f32.mrb[35].mxu1  ;;  %v1189_v25 = vadd.f32 %v1183_v19, %v3879_v31 }
 0xd44   :  { %v1193_v26 = vsel %vm87_vm0, %v1189_v25, 0.0  ;;  %v1190_v28 = vadd.f32 %v1186_v22, %v3881_v32  ;;  %v3548_v32 = vld [vmem:[%s4455_s10] sm:$0xff]  }
 0xd45   :  { %1194 = vadd.xlane.f32.xlu1 %v1193_v26  ;;  %3324 = vmatpush3.bf16.msra.mxu0 %v3548_v32 }
 0xd46   :  { %v1196_v29 = vsel %vm87_vm0, %v1190_v28, 0.0  ;;  %3325 = vmatprep.subr.bf16.mxu0 %v3717_v15 }
 0xd47   :  { %1197 = vadd.xlane.f32.xlu0 %v1196_v29 }
 0xd49   :  { %3326 = vmatpush3.bf16.msra.mxu0 %v3549_v41 }
 0xd4a   :  { %3343 = vmatprep.subr.bf16.mxu0 %v3717_v15 }
 0xdd2   :  { %v1195_v30 = vpop.xlane.xlu1 %1194 }
 0xdd3   :  { %v1199_v33 = vmul.f32 0.03125, %v1195_v30 }
 0xdd4   :  { %v1198_v34 = vpop.xlane.xlu0 %1197 }
 0xdd5   :  { %v1201_v35 = vsub.f32 %v1189_v25, %v1199_v33  ;;  %v1200_v36 = vmul.f32 0.03125, %v1198_v34  ;;  %v3029_v25 = vld [vmem:[%s4458_s13] ss:$0 sm:$0xff] }
 0xdd7   :  { %v1202_v37 = vsub.f32 %v1190_v28, %v1200_v36  ;;  %v1203_v38 = vmul.f32 %v1201_v35, %v1201_v35 }
 0xdd9   :  { %v1205_v40 = vsel %vm87_vm0, %v1203_v38, 0.0  ;;  %v1204_v42 = vmul.f32 %v1202_v37, %v1202_v37 }
 0xdda   :  { %1206 = vadd.xlane.f32.xlu0 %v1205_v40 }
 0xddb   :  { %v1208_v31 = vsel %vm87_vm0, %v1204_v42, 0.0 }
 0xdde   :  { %1209 = vadd.xlane.f32.xlu0 %v1208_v31 }
 0xe67   :  { %v1207_v12 = vpop.xlane.xlu0 %1206 }
 0xe68   :  { %v1211_v17 = vmul.f32 0.03125, %v1207_v12 }
 0xe6a   :  { %v1213_v18 = vadd.f32 1e-12, %v1211_v17 }
 0xe6b   :  { %v1210_v43 = vpop.xlane.xlu0 %1209 }
 0xe6c   :  { %3604 = vrsqrt.f32 %v1213_v18  ;;  %v1212_v44 = vmul.f32 0.03125, %v1210_v43 }
 0xe6e   :  { %v1214_v45 = vadd.f32 1e-12, %v1212_v44 }
 0xe70   :  { %3606 = vrsqrt.f32 %v1214_v45  ;;  %v3554_v45 = vld [vmem:[%s4493_s1 + $0x10] sm:$0xff]  }
 0xe76   :  { %v3605_v46 = vpop.eup %3604 }
 0xe77   :  { %v1217_v47 = vmul.f32 %v3605_v46, %v1201_v35  ;;  %v3555_v46 = vld [vmem:[%s4493_s1 + $0x18] sm:$0xff]  }
 0xe79   :  { %v1225_v50 = vmul.f32 %v3023_v48, %v1217_v47 }
 0xe7a   :  { %v3607_v49 = vpop.eup %3606 }
 0xe7b   :  { %v1218_v51 = vmul.f32 %v3607_v49, %v1202_v37  ;;  %v1233_v53 = vadd.f32 %v3024_v39, %v1225_v50 }
 0xe7d   :  { %v1226_v52 = vmul.f32 %v3023_v48, %v1218_v51 }
 0xe7f   :  { %v1234_v54 = vadd.f32 %v3024_v39, %v1226_v52 }
 0xe81   :  { %v1239_v55 = vpack.c.bf16 %v1234_v54, %v1233_v53 }
 0xe83   :  { %3328 = vmatmul.mubr.msk.bf16.vlgmr.msra.gmra.mrb[36].mxu0 %vm87_vm0, %v1239_v55 }
 0xe84   :  { %3347 = vmatprep.mubr.msk.bf16.mxu0 %vm3718_vm1, %v3717_v15  ;;  %3344 = vmatpush3.bf16.msra.mxu0 %v3554_v45 }
 0xe85   :  { %3345 = vmatprep.subr.bf16.mxu0 %v3717_v15 }
 0xe88   :  { %3346 = vmatpush3.bf16.msra.mxu0 %v3555_v46 }
 0xe89   :  { %3351 = vmatprep.subr.bf16.mxu0 %v3717_v15 }
 0xf56   :  { %v1296_v61 = vpop.f32.mrb[36].mxu0 }
 0xf57   :  { %v1297_v62 = vadd.f32 %v3025_v60, %v1296_v61  ;;  %v3329_v63 = vpop.f32.mrb[37].mxu0 }
 0xf58   :  { %v1299_v0 = vpop.f32.mrb[38].mxu0  ;;  %v3042_v63 = vld [vmem:[%s4496_s30 + $0x1] ss:$0 sm:$0xff]  ;;  %s4497_s30 = smov 80  }
 0xf59   :  { %v1305_v1 = vmul.f32 0.044715, %v1297_v62  ;;  %v1300_v2 = vadd.f32 %v3025_v60, %v1299_v0  ;;  %v3330_v3 = vpop.f32.mrb[39].mxu0  ;;  %v1303_v27 = vmul.f32 0.5, %v1297_v62 }
 0xf5b   :  { %v1307_v4 = vmul.f32 %v1305_v1, %v1297_v62  ;;  %v1306_v5 = vmul.f32 0.044715, %v1300_v2  ;;  %v1304_v19 = vmul.f32 0.5, %v1300_v2 }
 0xf5d   :  { %v1309_v6 = vmul.f32 %v1307_v4, %v1297_v62  ;;  %v1308_v7 = vmul.f32 %v1306_v5, %v1300_v2 }
 0xf5f   :  { %v1311_v8 = vadd.f32 %v1309_v6, %v1297_v62  ;;  %v1310_v9 = vmul.f32 %v1308_v7, %v1300_v2 }
 0xf61   :  { %v1313_v10 = vmul.f32 0.7978846, %v1311_v8  ;;  %v1312_v11 = vadd.f32 %v1310_v9, %v1300_v2 }
 0xf63   :  { %3608 = vtanh.f32 %v1313_v10  ;;  %v1314_v13 = vmul.f32 0.7978846, %v1312_v11 }
 0xf65   :  { %3610 = vtanh.f32 %v1314_v13 }
 0xf6d   :  { %v3609_v14 = vpop.eup %3608 }
 0xf6e   :  { %v1317_v16 = vadd.f32 1.0, %v3609_v14 }
 0xf6f   :  { %v3611_v24 = vpop.eup %3610 }
 0xf70   :  { %v1318_v20 = vadd.f32 1.0, %v3611_v24  ;;  %v1319_v21 = vmul.f32 %v1317_v16, %v1303_v27 }
 0xf72   :  { %v1320_v22 = vmul.f32 %v1318_v20, %v1304_v19 }
 0xf74   :  { %v1329_v23 = vpack.c.bf16 %v1320_v22, %v1319_v21 }
 0xf76   :  { %3340 = vmatmul.mubr.msk.bf16.vlgmr.msra.gmra.mrb[36].mxu1 %vm1361_vm6, %v1329_v23 }
 0xf77   :  { %3359 = vmatprep.mubr.msk.bf16.mxu1 %vm3718_vm1, %v3717_v15 }
0x1049   :  { %v1399_v26 = vpop.f32.mrb[36].mxu1 }
0x104a   :  { %v1400_v28 = vadd.f32 %v3029_v25, %v1399_v26  ;;  %v3341_v29 = vpop.f32.mrb[37].mxu1 }
0x104b   :  { %v1402_v30 = vpop.f32.mrb[38].mxu1 }
0x104c   :  { %v1403_v33 = vadd.f32 %v3029_v25, %v1402_v30  ;;  %v3342_v34 = vpop.f32.mrb[39].mxu1  ;;  %v1406_v35 = vadd.f32 %v1400_v28, %v1233_v53  ;;  %v3035_v53 = vld [vmem:[%s4459_s14] ss:$0 sm:$0xff] }
0x104e   :  { %v1410_v36 = vsel %vm87_vm0, %v1406_v35, 0.0  ;;  %v1407_v37 = vadd.f32 %v1403_v33, %v1234_v54 }
0x104f   :  { %1411 = vadd.xlane.f32.xlu1 %v1410_v36 }
0x1050   :  { %v1413_v38 = vsel %vm87_vm0, %v1407_v37, 0.0 }
0x1051   :  { %1414 = vadd.xlane.f32.xlu0 %v1413_v38 }
0x10dc   :  { %v1412_v40 = vpop.xlane.xlu1 %1411 }
0x10dd   :  { %v1416_v42 = vmul.f32 0.03125, %v1412_v40 }
0x10de   :  { %v1415_v31 = vpop.xlane.xlu0 %1414 }
0x10df   :  { %v1418_v32 = vsub.f32 %v1406_v35, %v1416_v42  ;;  %v1417_v41 = vmul.f32 0.03125, %v1415_v31 }
0x10e1   :  { %v1419_v12 = vsub.f32 %v1407_v37, %v1417_v41  ;;  %v1420_v17 = vmul.f32 %v1418_v32, %v1418_v32 }
0x10e3   :  { %v1422_v18 = vsel %vm87_vm0, %v1420_v17, 0.0  ;;  %v1421_v43 = vmul.f32 %v1419_v12, %v1419_v12 }
0x10e4   :  { %1423 = vadd.xlane.f32.xlu1 %v1422_v18 }
0x10e5   :  { %v1425_v44 = vsel %vm87_vm0, %v1421_v43, 0.0 }
0x10e6   :  { %1426 = vadd.xlane.f32.xlu0 %v1425_v44 }
0x1171   :  { %v1424_v47 = vpop.xlane.xlu1 %1423 }
0x1172   :  { %v1428_v48 = vmul.f32 0.03125, %v1424_v47 }
0x1173   :  { %v1427_v49 = vpop.xlane.xlu0 %1426 }
0x1174   :  { %v1430_v50 = vadd.f32 1e-12, %v1428_v48  ;;  %v1429_v51 = vmul.f32 0.03125, %v1427_v49 }
0x1176   :  { %3612 = vrsqrt.f32 %v1430_v50  ;;  %v1431_v39 = vadd.f32 1e-12, %v1429_v51 }
0x1178   :  { %3614 = vrsqrt.f32 %v1431_v39 }
0x1180   :  { %v3613_v52 = vpop.eup %3612 }
0x1181   :  { %v1434_v54 = vmul.f32 %v3613_v52, %v1418_v32 }
0x1182   :  { %v3615_v55 = vpop.eup %3614 }
0x1183   :  { %v1442_v56 = vmul.f32 %v3035_v53, %v1434_v54  ;;  %v1435_v57 = vmul.f32 %v3615_v55, %v1419_v12 }
0x1185   :  { %v1443_v59 = vmul.f32 %v3035_v53, %v1435_v57  ;;  %v4141_v60 = vadd.f32 %v3036_v58, %v1442_v56 }
0x1187   :  { %v4143_v61 = vadd.f32 %v3036_v58, %v1443_v59 }
0x1189   :  { %v1457_v62 = vpack.c.bf16 %v4143_v61, %v4141_v60 }
0x118b   :  { %3348 = vmatmul.mubr.msk.bf16.vlgmr.msra.gmra.mrb[40].mxu0 %vm87_vm0, %v1457_v62 }
0x118c   :  { %3353 = vmatprep.mubr.msk.bf16.mxu0 %vm3718_vm1, %v3717_v15 }
0x125e   :  { %v1515_v0 = vpop.f32.mrb[40].mxu0 }
0x125f   :  { %v1516_v1 = vadd.f32 %v3042_v63, %v1515_v0  ;;  %v3349_v2 = vpop.f32.mrb[41].mxu0 }
0x1260   :  { %v1518_v3 = vpop.f32.mrb[42].mxu0 }
0x1261   :  { %v4153_v4 = vpack.c.bf16 %v1516_v1, %v1516_v1  ;;  %v1519_v5 = vadd.f32 %v3042_v63, %v1518_v3  ;;  %v3350_v6 = vpop.f32.mrb[43].mxu0 }
0x1263   :  { %v4155_v7 = vpack.c.bf16 %v1519_v5, %v1519_v5  ;;  %1525 = vrot.lane.b32.xlu1 %v4153_v4, %s3719_s5 }
0x1265   :  { %1574 = vrot.lane.b32.xlu0 %v4155_v7, %s3719_s5  ;;  %s4498_s5 = smov 112  }
0x12d5   :  { %v1526_v8 = vpop.permute.xlu1 %1525 }
0x12d6   :  { %v1531_v9 = vsel %vm204_vm2, %v1526_v8, 0 }
0x12d7   :  { %3352 = vmatpush3.bf16.xpose.msra.mxu0 %v1531_v9  ;;  %v1575_v10 = vpop.permute.xlu0 %1574 }
0x12d8   :  { %v1580_v11 = vsel %vm204_vm2, %v1575_v10, 0  ;;  %3363 = vmatprep.subr.bf16.mxu0 %v3717_v15 }
0x12d9   :  { %3358 = vmatpush3.bf16.xpose.msra.mxu1 %v1580_v11 }
0x12da   :  { %3369 = vmatprep.subr.bf16.mxu1 %v3717_v15 }
0x12de   :  { %3354 = vmatmul.mubr.msk.bf16.vlgmr.msra.gmra.mrb[44].mxu0 %vm204_vm2, %v4153_v4 }
0x12df   :  { %3365 = vmatprep.mubr.msk.bf16.mxu0 %vm3718_vm1, %v3717_v15 }
0x12e0   :  { %3360 = vmatmul.mubr.msk.bf16.vlgmr.msra.gmra.mrb[40].mxu1 %vm204_vm2, %v4155_v7 }
0x12e1   :  { %3371 = vmatprep.mubr.msk.bf16.mxu1 %vm3718_vm1, %v3717_v15 }
0x13b1   :  { %v1567_v13 = vpop.f32.mrb[44].mxu0 }
0x13b2   :  { %v1622_v14 = vmul.f32 0.35355338, %v1567_v13  ;;  %v3355_v16 = vpop.f32.mrb[45].mxu0 }
0x13b3   :  { %v1570_v24 = vpop.f32.mrb[46].mxu0  ;;  %v1616_v27 = vpop.f32.mrb[40].mxu1 }
0x13b4   :  { %v1623_v19 = vmul.f32 0.35355338, %v1616_v27  ;;  %v3356_v20 = vpop.f32.mrb[47].mxu0  ;;  %v3361_v21 = vpop.f32.mrb[41].mxu1  ;;  %v1624_v22 = vsel %vm204_vm2, %v1622_v14, -inf }
0x13b5   :  { %v1619_v23 = vpop.f32.mrb[42].mxu1  ;;  %1625 = vmax.xlane.f32.xlu1 %v1624_v22 }
0x13b6   :  { %v3362_v25 = vpop.f32.mrb[43].mxu1  ;;  %v1627_v26 = vsel %vm204_vm2, %v1623_v19, -inf }
0x13b7   :  { %1628 = vmax.xlane.f32.xlu0 %v1627_v26 }
0x13c6   :  { %1648 = vrot.lane.b32.xlu1 %v4153_v4, %s3720_s22 }
0x1442   :  { %v1626_v28 = vpop.xlane.xlu1 %1625 }
0x1443   :  { %v1630_v29 = vsub.f32 %v1622_v14, %v1626_v28 }
0x1444   :  { %v1629_v30 = vpop.xlane.xlu0 %1628 }
0x1445   :  { %v1632_v33 = vmul.f32 1.442695, %v1630_v29  ;;  %v1631_v34 = vsub.f32 %v1623_v19, %v1629_v30 }
0x1446   :  { %v1649_v35 = vpop.permute.xlu1 %1648 }
0x1447   :  { %3616 = vpow2.f32 %v1632_v33  ;;  %v1634_v36 = vmul.f32 1.442695, %v1631_v34  ;;  %v1654_v37 = vsel %vm331_vm3, %v1649_v35, 0 }
0x1448   :  { %3364 = vmatpush3.bf16.msra.mxu0 %v1654_v37 }
0x1449   :  { %3618 = vpow2.f32 %v1634_v36  ;;  %3375 = vmatprep.subr.bf16.mxu0 %v3717_v15 }
0x1451   :  { %v3617_v38 = vpop.eup %3616 }
0x1452   :  { %v1636_v40 = vsel %vm204_vm2, %v3617_v38, 0.0 }
0x1453   :  { %v3619_v42 = vpop.eup %3618  ;;  %1637 = vadd.xlane.f32.xlu1 %v1636_v40 }
0x1454   :  { %v1639_v31 = vsel %vm204_vm2, %v3619_v42, 0.0 }
0x1455   :  { %1640 = vadd.xlane.f32.xlu0 %v1639_v31 }
0x1464   :  { %1746 = vrot.lane.b32.xlu1 %v4153_v4, %s3721_s23 }
0x1468   :  { %1796 = vrot.lane.b32.xlu1 %v4155_v7, %s3721_s23  ;;  %s4500_s23 = smov 72  }
0x146b   :  { %1696 = vrot.lane.b32.xlu0 %v4155_v7, %s3720_s22  ;;  %s4499_s22 = smov 48  }
0x146c   :  { %1744 = vrot.lane.b32.xlu1 %v4153_v4, %s3722_s24 }
0x146f   :  { %1794 = vrot.lane.b32.xlu0 %v4155_v7, %s3722_s24  ;;  %s4501_s24 = smov 104  }
0x14e0   :  { %v1638_v32 = vpop.xlane.xlu1 %1637 }
0x14e1   :  { %3620 = vrcp.f32 %v1638_v32 }
0x14e2   :  { %v1641_v41 = vpop.xlane.xlu0 %1640 }
0x14e3   :  { %3622 = vrcp.f32 %v1641_v41 }
0x14e4   :  { %v1747_v18 = vpop.permute.xlu1 %1746 }
0x14e5   :  { %v1752_v49 = vsel %vm204_vm2, %v1747_v18, 0 }
0x14e6   :  { %v1697_v12 = vpop.permute.xlu0 %1696 }
0x14e7   :  { %v1702_v17 = vsel %vm331_vm3, %v1697_v12, 0 }
0x14e8   :  { %3370 = vmatpush3.bf16.msra.mxu1 %v1702_v17  ;;  %v1797_v48 = vpop.permute.xlu1 %1796 }
0x14e9   :  { %3381 = vmatprep.subr.bf16.mxu1 %v3717_v15  ;;  %v1802_v51 = vsel %vm204_vm2, %v1797_v48, 0 }
0x14ea   :  { %v1795_v52 = vpop.permute.xlu0 %1794 }
0x14eb   :  { %v3621_v43 = vpop.eup %3620 }
0x14ec   :  { %v1644_v44 = vmul.f32 %v3621_v43, %v3617_v38  ;;  %v1745_v39 = vpop.permute.xlu1 %1744 }
0x14ed   :  { %v3623_v45 = vpop.eup %3622 }
0x14ee   :  { %v1645_v46 = vmul.f32 %v3623_v45, %v3619_v42  ;;  %v1646_v47 = vpack.c.bf16 %v1644_v44, %v1644_v44 }
0x14f0   :  { %3366 = vmatmul.mubr.msk.bf16.vlgmr.msra.gmra.mrb[48].mxu0 %vm204_vm2, %v1646_v47  ;;  %v1647_v50 = vpack.c.bf16 %v1645_v46, %v1645_v46 }
0x14f1   :  { %3376 = vmatpush3.bf16.xpose.msra.mxu0 %v1752_v49  ;;  %3377 = vmatprep.mubr.msk.bf16.mxu0 %vm3718_vm1, %v3717_v15 }
0x14f2   :  { %3372 = vmatmul.mubr.msk.bf16.vlgmr.msra.gmra.mrb[44].mxu1 %vm204_vm2, %v1647_v50  ;;  %3387 = vmatprep.subr.bf16.mxu0 %v3717_v15 }
0x14f3   :  { %3382 = vmatpush3.bf16.xpose.msra.mxu1 %v1802_v51  ;;  %3383 = vmatprep.mubr.msk.bf16.mxu1 %vm3718_vm1, %v3717_v15 }
0x14f4   :  { %3393 = vmatprep.subr.bf16.mxu1 %v3717_v15 }
0x14f8   :  { %3378 = vmatmul.mubr.msk.bf16.vlgmr.msra.gmra.mrb[52].mxu0 %vm204_vm2, %v1745_v39 }
0x14f9   :  { %3389 = vmatprep.mubr.msk.bf16.mxu0 %vm3718_vm1, %v3717_v15 }
0x14fa   :  { %3384 = vmatmul.mubr.msk.bf16.vlgmr.msra.gmra.mrb[48].mxu1 %vm204_vm2, %v1795_v52 }
0x14fb   :  { %3395 = vmatprep.mubr.msk.bf16.mxu1 %vm3718_vm1, %v3717_v15 }
0x15c3   :  { %v4209_v53 = vpop.f32.mrb[48].mxu0 }
0x15c4   :  { %v3367_v54 = vpop.f32.mrb[49].mxu0 }
0x15c5   :  { %v1693_v55 = vpop.f32.mrb[50].mxu0  ;;  %v4211_v56 = vpop.f32.mrb[44].mxu1 }
0x15c6   :  { %v3368_v57 = vpop.f32.mrb[51].mxu0  ;;  %v3373_v58 = vpop.f32.mrb[45].mxu1 }
0x15c7   :  { %v1741_v59 = vpop.f32.mrb[46].mxu1 }
0x15c8   :  { %v3374_v62 = vpop.f32.mrb[47].mxu1 }
0x15cb   :  { %v1788_v63 = vpop.f32.mrb[52].mxu0 }
0x15cc   :  { %v1844_v0 = vmul.f32 0.35355338, %v1788_v63  ;;  %v3379_v1 = vpop.f32.mrb[53].mxu0 }
0x15cd   :  { %v1791_v2 = vpop.f32.mrb[54].mxu0  ;;  %v1838_v3 = vpop.f32.mrb[48].mxu1 }
0x15ce   :  { %v1845_v5 = vmul.f32 0.35355338, %v1838_v3  ;;  %v3380_v6 = vpop.f32.mrb[55].mxu0  ;;  %v3385_v8 = vpop.f32.mrb[49].mxu1  ;;  %v1846_v9 = vsel %vm204_vm2, %v1844_v0, -inf }
0x15cf   :  { %v1841_v10 = vpop.f32.mrb[50].mxu1  ;;  %1847 = vmax.xlane.f32.xlu1 %v1846_v9 }
0x15d0   :  { %v3386_v11 = vpop.f32.mrb[51].mxu1  ;;  %v1849_v13 = vsel %vm204_vm2, %v1845_v5, -inf }
0x15d1   :  { %1850 = vmax.xlane.f32.xlu0 %v1849_v13 }
0x15e0   :  { %1870 = vrot.lane.b32.xlu1 %v4153_v4, %s3723_s2 }
0x15e4   :  { %1968 = vrot.lane.b32.xlu1 %v4153_v4, %s4497_s30 }
0x15e8   :  { %2018 = vrot.lane.b32.xlu1 %v4155_v7, %s4497_s30 }
0x15ec   :  { %1966 = vrot.lane.b32.xlu1 %v4153_v4, %s4498_s5 }
0x165c   :  { %v1848_v14 = vpop.xlane.xlu1 %1847 }
0x165d   :  { %v1852_v16 = vsub.f32 %v1844_v0, %v1848_v14 }
0x165e   :  { %v1851_v24 = vpop.xlane.xlu0 %1850 }
0x165f   :  { %v1854_v27 = vmul.f32 1.442695, %v1852_v16  ;;  %v1853_v19 = vsub.f32 %v1845_v5, %v1851_v24 }
0x1660   :  { %v1871_v20 = vpop.permute.xlu1 %1870 }
0x1661   :  { %3624 = vpow2.f32 %v1854_v27  ;;  %v1856_v21 = vmul.f32 1.442695, %v1853_v19  ;;  %v1876_v22 = vsel %vm331_vm3, %v1871_v20, 0 }
0x1662   :  { %3388 = vmatpush3.bf16.msra.mxu0 %v1876_v22 }
0x1663   :  { %3626 = vpow2.f32 %v1856_v21  ;;  %3399 = vmatprep.subr.bf16.mxu0 %v3717_v15 }
0x1664   :  { %v1969_v36 = vpop.permute.xlu1 %1968 }
0x1665   :  { %v1974_v42 = vsel %vm204_vm2, %v1969_v36, 0 }
0x1668   :  { %v2019_v32 = vpop.permute.xlu1 %2018 }
0x1669   :  { %v2024_v12 = vsel %vm204_vm2, %v2019_v32, 0 }
0x166b   :  { %v3625_v23 = vpop.eup %3624 }
0x166c   :  { %v1858_v25 = vsel %vm204_vm2, %v3625_v23, 0.0  ;;  %v1967_v17 = vpop.permute.xlu1 %1966 }
0x166d   :  { %v3627_v26 = vpop.eup %3626  ;;  %1859 = vadd.xlane.f32.xlu0 %v1858_v25 }
0x166e   :  { %v1861_v28 = vsel %vm204_vm2, %v3627_v26, 0.0 }
0x1671   :  { %1862 = vadd.xlane.f32.xlu0 %v1861_v28 }
0x1687   :  { %1918 = vrot.lane.b32.xlu0 %v4155_v7, %s3723_s2  ;;  %s4502_s2 = smov 40  }
0x168b   :  { %2016 = vrot.lane.b32.xlu0 %v4155_v7, %s4498_s5 }
0x16fa   :  { %v1860_v29 = vpop.xlane.xlu0 %1859 }
0x16fb   :  { %3628 = vrcp.f32 %v1860_v29 }
0x16fe   :  { %v1863_v30 = vpop.xlane.xlu0 %1862 }
0x16ff   :  { %3630 = vrcp.f32 %v1863_v30 }
0x1702   :  { %v1919_v33 = vpop.permute.xlu0 %1918 }
0x1703   :  { %v1924_v34 = vsel %vm331_vm3, %v1919_v33, 0 }
0x1704   :  { %3394 = vmatpush3.bf16.msra.mxu1 %v1924_v34 }
0x1705   :  { %v3629_v35 = vpop.eup %3628  ;;  %3405 = vmatprep.subr.bf16.mxu1 %v3717_v15 }
0x1706   :  { %v1866_v37 = vmul.f32 %v3629_v35, %v3625_v23  ;;  %v2017_v18 = vpop.permute.xlu0 %2016 }
0x1708   :  { %v1868_v38 = vpack.c.bf16 %v1866_v37, %v1866_v37 }
0x1709   :  { %v3631_v40 = vpop.eup %3630 }
0x170a   :  { %v1867_v31 = vmul.f32 %v3631_v40, %v3627_v26  ;;  %3390 = vmatmul.mubr.msk.bf16.vlgmr.msra.gmra.mrb[56].mxu0 %vm204_vm2, %v1868_v38 }
0x170b   :  { %3400 = vmatpush3.bf16.xpose.msra.mxu0 %v1974_v42  ;;  %3401 = vmatprep.mubr.msk.bf16.mxu0 %vm3718_vm1, %v3717_v15 }
0x170c   :  { %v1869_v41 = vpack.c.bf16 %v1867_v31, %v1867_v31  ;;  %3411 = vmatprep.subr.bf16.mxu0 %v3717_v15 }
0x170e   :  { %3396 = vmatmul.mubr.msk.bf16.vlgmr.msra.gmra.mrb[52].mxu1 %vm204_vm2, %v1869_v41 }
0x170f   :  { %3406 = vmatpush3.bf16.xpose.msra.mxu1 %v2024_v12  ;;  %3407 = vmatprep.mubr.msk.bf16.mxu1 %vm3718_vm1, %v3717_v15 }
0x1710   :  { %3417 = vmatprep.subr.bf16.mxu1 %v3717_v15 }
0x1712   :  { %3402 = vmatmul.mubr.msk.bf16.vlgmr.msra.gmra.mrb[60].mxu0 %vm204_vm2, %v1967_v17 }
0x1713   :  { %3413 = vmatprep.mubr.msk.bf16.mxu0 %vm3718_vm1, %v3717_v15 }
0x1716   :  { %3408 = vmatmul.mubr.msk.bf16.vlgmr.msra.gmra.mrb[56].mxu1 %vm204_vm2, %v2017_v18 }
0x1717   :  { %3419 = vmatprep.mubr.msk.bf16.mxu1 %vm3718_vm1, %v3717_v15 }
0x17dd   :  { %v4249_v43 = vpop.f32.mrb[56].mxu0 }
0x17de   :  { %v3391_v44 = vpop.f32.mrb[57].mxu0 }
0x17df   :  { %v1915_v45 = vpop.f32.mrb[58].mxu0 }
0x17e0   :  { %v3392_v46 = vpop.f32.mrb[59].mxu0 }
0x17e1   :  { %v4251_v47 = vpop.f32.mrb[52].mxu1 }
0x17e2   :  { %v3528_v48 = vpack.i.bf16 %v4251_v47, %v4249_v43  ;;  %v3397_v49 = vpop.f32.mrb[53].mxu1 }
0x17e3   :  { %v1963_v50 = vpop.f32.mrb[54].mxu1 }
0x17e4   :  { %v3398_v51 = vpop.f32.mrb[55].mxu1 }
0x17e5   :  { %v2010_v39 = vpop.f32.mrb[60].mxu0 }
0x17e6   :  { %v2066_v52 = vmul.f32 0.35355338, %v2010_v39  ;;  %v3403_v54 = vpop.f32.mrb[61].mxu0 }
0x17e7   :  { %v2013_v55 = vpop.f32.mrb[62].mxu0 }
0x17e8   :  { %v3404_v57 = vpop.f32.mrb[63].mxu0  ;;  %v2068_v58 = vsel %vm204_vm2, %v2066_v52, -inf }
0x17e9   :  { %v2060_v59 = vpop.f32.mrb[56].mxu1  ;;  %2069 = vmax.xlane.f32.xlu1 %v2068_v58 }
0x17ea   :  { %v2067_v62 = vmul.f32 0.35355338, %v2060_v59  ;;  %v3409_v63 = vpop.f32.mrb[57].mxu1 }
0x17eb   :  { %v2063_v0 = vpop.f32.mrb[58].mxu1 }
0x17ec   :  { %v3410_v1 = vpop.f32.mrb[59].mxu1  ;;  %v2071_v2 = vsel %vm204_vm2, %v2067_v62, -inf }
0x17ed   :  { %2072 = vmax.xlane.f32.xlu0 %v2071_v2 }
0x17fa   :  { %2092 = vrot.lane.b32.xlu1 %v4153_v4, %s4499_s22 }
0x17fe   :  { %2190 = vrot.lane.b32.xlu1 %v4153_v4, %s4500_s23 }
0x1802   :  { %2240 = vrot.lane.b32.xlu1 %v4155_v7, %s4500_s23 }
0x1806   :  { %2188 = vrot.lane.b32.xlu1 %v4153_v4, %s4501_s24 }
0x1876   :  { %v2070_v3 = vpop.xlane.xlu1 %2069 }
0x1877   :  { %v2074_v5 = vsub.f32 %v2066_v52, %v2070_v3 }
0x1879   :  { %v2076_v6 = vmul.f32 1.442695, %v2074_v5 }
0x187a   :  { %v2073_v8 = vpop.xlane.xlu0 %2072  ;;  %v2093_v9 = vpop.permute.xlu1 %2092 }
0x187b   :  { %3632 = vpow2.f32 %v2076_v6  ;;  %v2075_v10 = vsub.f32 %v2067_v62, %v2073_v8  ;;  %v2098_v11 = vsel %vm331_vm3, %v2093_v9, 0 }
0x187c   :  { %3412 = vmatpush3.bf16.msra.mxu0 %v2098_v11 }
0x187d   :  { %v2078_v13 = vmul.f32 1.442695, %v2075_v10  ;;  %3423 = vmatprep.subr.bf16.mxu0 %v3717_v15 }
0x187e   :  { %v2191_v25 = vpop.permute.xlu1 %2190 }
0x187f   :  { %3634 = vpow2.f32 %v2078_v13  ;;  %v2196_v30 = vsel %vm204_vm2, %v2191_v25, 0 }
0x1882   :  { %v2241_v34 = vpop.permute.xlu1 %2240 }
0x1883   :  { %v2246_v36 = vsel %vm204_vm2, %v2241_v34, 0 }
0x1885   :  { %v3633_v14 = vpop.eup %3632 }
0x1886   :  { %v2080_v16 = vsel %vm204_vm2, %v3633_v14, 0.0  ;;  %v2189_v37 = vpop.permute.xlu1 %2188 }
0x1887   :  { %2081 = vadd.xlane.f32.xlu0 %v2080_v16 }
0x1889   :  { %v3635_v24 = vpop.eup %3634 }
0x188a   :  { %v2083_v27 = vsel %vm204_vm2, %v3635_v24, 0.0 }
0x188b   :  { %2084 = vadd.xlane.f32.xlu0 %v2083_v27 }
0x18a1   :  { %2140 = vrot.lane.b32.xlu0 %v4155_v7, %s4499_s22 }
0x18a5   :  { %2238 = vrot.lane.b32.xlu0 %v4155_v7, %s4501_s24 }
0x1914   :  { %v2082_v19 = vpop.xlane.xlu0 %2081 }
0x1915   :  { %3636 = vrcp.f32 %v2082_v19  ;;  %v3556_v19 = vld [vmem:[%s4451_s6 + $0x10] sm:$0xff]  }
0x1918   :  { %v2085_v20 = vpop.xlane.xlu0 %2084 }
0x1919   :  { %3638 = vrcp.f32 %v2085_v20  ;;  %v3557_v20 = vld [vmem:[%s4451_s6 + $0x18] sm:$0xff]  }
0x191c   :  { %v2141_v21 = vpop.permute.xlu0 %2140 }
0x191d   :  { %v2146_v22 = vsel %vm331_vm3, %v2141_v21, 0 }
0x191e   :  { %3418 = vmatpush3.bf16.msra.mxu1 %v2146_v22 }
0x191f   :  { %v3637_v23 = vpop.eup %3636  ;;  %3429 = vmatprep.subr.bf16.mxu1 %v3717_v15 }
0x1920   :  { %v2088_v26 = vmul.f32 %v3637_v23, %v3633_v14  ;;  %v2239_v38 = vpop.permute.xlu0 %2238 }
0x1922   :  { %v2090_v28 = vpack.c.bf16 %v2088_v26, %v2088_v26 }
0x1923   :  { %v3639_v29 = vpop.eup %3638 }
0x1924   :  { %v2089_v33 = vmul.f32 %v3639_v29, %v3635_v24  ;;  %3414 = vmatmul.mubr.msk.bf16.vlgmr.msra.gmra.mrb[64].mxu0 %vm204_vm2, %v2090_v28 }
0x1925   :  { %3424 = vmatpush3.bf16.xpose.msra.mxu0 %v2196_v30  ;;  %3425 = vmatprep.mubr.msk.bf16.mxu0 %vm3718_vm1, %v3717_v15 }
0x1926   :  { %v2091_v35 = vpack.c.bf16 %v2089_v33, %v2089_v33  ;;  %3435 = vmatprep.subr.bf16.mxu0 %v3717_v15 }
0x1928   :  { %3420 = vmatmul.mubr.msk.bf16.vlgmr.msra.gmra.mrb[60].mxu1 %vm204_vm2, %v2091_v35 }
0x1929   :  { %3430 = vmatpush3.bf16.xpose.msra.mxu1 %v2246_v36  ;;  %3431 = vmatprep.mubr.msk.bf16.mxu1 %vm3718_vm1, %v3717_v15 }
0x192a   :  { %3441 = vmatprep.subr.bf16.mxu1 %v3717_v15 }
0x192c   :  { %3426 = vmatmul.mubr.msk.bf16.vlgmr.msra.gmra.mrb[68].mxu0 %vm204_vm2, %v2189_v37 }
0x192d   :  { %3437 = vmatprep.mubr.msk.bf16.mxu0 %vm3718_vm1, %v3717_v15 }
0x1930   :  { %3432 = vmatmul.mubr.msk.bf16.vlgmr.msra.gmra.mrb[64].mxu1 %vm204_vm2, %v2239_v38 }
0x1931   :  { %3443 = vmatprep.mubr.msk.bf16.mxu1 %vm3718_vm1, %v3717_v15 }
0x19f7   :  { %v2134_v40 = vpop.f32.mrb[64].mxu0 }
0x19f8   :  { %v3415_v42 = vpop.f32.mrb[65].mxu0 }
0x19f9   :  { %v2137_v31 = vpop.f32.mrb[66].mxu0 }
0x19fa   :  { %v3416_v32 = vpop.f32.mrb[67].mxu0 }
0x19fb   :  { %v2182_v41 = vpop.f32.mrb[60].mxu1 }
0x19fc   :  { %v3533_v12 = vpack.i.bf16 %v2182_v41, %v2134_v40  ;;  %v3421_v17 = vpop.f32.mrb[61].mxu1 }
0x19fd   :  { %v2185_v18 = vpop.f32.mrb[62].mxu1 }
0x19fe   :  { %v3422_v44 = vpop.f32.mrb[63].mxu1 }
0x19ff   :  { %v2232_v45 = vpop.f32.mrb[68].mxu0 }
0x1a00   :  { %v2288_v46 = vmul.f32 0.35355338, %v2232_v45  ;;  %v3427_v49 = vpop.f32.mrb[69].mxu0 }
0x1a01   :  { %v2235_v50 = vpop.f32.mrb[70].mxu0 }
0x1a02   :  { %v3428_v51 = vpop.f32.mrb[71].mxu0  ;;  %v2290_v39 = vsel %vm204_vm2, %v2288_v46, -inf }
0x1a03   :  { %v2282_v52 = vpop.f32.mrb[64].mxu1  ;;  %2291 = vmax.xlane.f32.xlu1 %v2290_v39 }
0x1a04   :  { %v2289_v54 = vmul.f32 0.35355338, %v2282_v52  ;;  %v3433_v55 = vpop.f32.mrb[65].mxu1 }
0x1a05   :  { %v2285_v57 = vpop.f32.mrb[66].mxu1 }
0x1a06   :  { %v3434_v58 = vpop.f32.mrb[67].mxu1  ;;  %v2293_v59 = vsel %vm204_vm2, %v2289_v54, -inf }
0x1a07   :  { %2294 = vmax.xlane.f32.xlu0 %v2293_v59 }
0x1a14   :  { %2314 = vrot.lane.b32.xlu1 %v4153_v4, %s4502_s2 }
0x1a18   :  { %3529 = vrot.lane.b32.xlu1 %v3528_v48, %s4503_s28 }
0x1a1c   :  { %3534 = vrot.lane.b32.xlu1 %v3533_v12, %s4504_s0 }
0x1a90   :  { %v2292_v62 = vpop.xlane.xlu1 %2291 }
0x1a91   :  { %v2296_v63 = vsub.f32 %v2288_v46, %v2292_v62 }
0x1a93   :  { %v2298_v0 = vmul.f32 1.442695, %v2296_v63 }
0x1a94   :  { %v2295_v1 = vpop.xlane.xlu0 %2294  ;;  %v2315_v2 = vpop.permute.xlu1 %2314 }
0x1a95   :  { %3640 = vpow2.f32 %v2298_v0  ;;  %v2297_v3 = vsub.f32 %v2289_v54, %v2295_v1  ;;  %v2320_v5 = vsel %vm331_vm3, %v2315_v2, 0 }
0x1a96   :  { %3436 = vmatpush3.bf16.msra.mxu0 %v2320_v5 }
0x1a97   :  { %v2300_v6 = vmul.f32 1.442695, %v2297_v3  ;;  %3447 = vmatprep.subr.bf16.mxu0 %v3717_v15 }
0x1a98   :  { %v3530_v34 = vpop.permute.xlu1 %3529 }
0x1a99   :  { %3642 = vpow2.f32 %v2300_v6  ;;  %v3532_v36 = vunpack.i.h.bf16 %v3530_v34  ;;  %v3531_v37 = vunpack.i.l.bf16 %v3530_v34 }
0x1a9b   :  { %v2435_v31 = vsel %vm204_vm2, %v4211_v56, %v3532_v36  ;;  %v2434_v32 = vsel %vm204_vm2, %v4209_v53, %v3531_v37  ;;  %v3067_v53 = vld [vmem:[%s4452_s7 + $0x1] ss:$0 sm:$0xff] }
0x1a9c   :  { %v3535_v35 = vpop.permute.xlu1 %3534 }
0x1a9d   :  { %v3537_v38 = vunpack.i.h.bf16 %v3535_v35  ;;  %v3536_v40 = vunpack.i.l.bf16 %v3535_v35 }
0x1a9f   :  { %v3641_v4 = vpop.eup %3640  ;;  %v2436_v17 = vsel %vm1115_vm4, %v2434_v32, %v3536_v40  ;;  %v2437_v18 = vsel %vm1115_vm4, %v2435_v31, %v3537_v38 }
0x1aa0   :  { %v2302_v43 = vsel %vm204_vm2, %v3641_v4, 0.0 }
0x1aa1   :  { %2303 = vadd.xlane.f32.xlu0 %v2302_v43 }
0x1aa3   :  { %v3643_v47 = vpop.eup %3642 }
0x1aa4   :  { %v2305_v48 = vsel %vm204_vm2, %v3643_v47, 0.0 }
0x1aa5   :  { %2306 = vadd.xlane.f32.xlu0 %v2305_v48 }
0x1abb   :  { %2362 = vrot.lane.b32.xlu0 %v4155_v7, %s4502_s2 }
0x1b2e   :  { %v2304_v8 = vpop.xlane.xlu0 %2303 }
0x1b2f   :  { %3644 = vrcp.f32 %v2304_v8 }
0x1b32   :  { %v2307_v9 = vpop.xlane.xlu0 %2306 }
0x1b33   :  { %3646 = vrcp.f32 %v2307_v9 }
0x1b36   :  { %v2363_v10 = vpop.permute.xlu0 %2362 }
0x1b37   :  { %v2368_v11 = vsel %vm331_vm3, %v2363_v10, 0 }
0x1b38   :  { %3442 = vmatpush3.bf16.msra.mxu1 %v2368_v11 }
0x1b39   :  { %v3645_v13 = vpop.eup %3644  ;;  %3455 = vmatprep.subr.bf16.mxu1 %v3717_v15 }
0x1b3a   :  { %v2310_v14 = vmul.f32 %v3645_v13, %v3641_v4  ;;  %v3559_v4 = vld [vmem:[%s4455_s10 + $0x18] sm:$0xff]  }
0x1b3c   :  { %v2312_v16 = vpack.c.bf16 %v2310_v14, %v2310_v14  ;;  %v3073_v14 = vld [vmem:[%s4453_s8 + $0x1] ss:$0 sm:$0xff] }
0x1b3d   :  { %v3647_v24 = vpop.eup %3646 }
0x1b3e   :  { %v2311_v27 = vmul.f32 %v3647_v24, %v3643_v47  ;;  %3438 = vmatmul.mubr.msk.bf16.vlgmr.msra.gmra.mrb[72].mxu0 %vm204_vm2, %v2312_v16 }
0x1b3f   :  { %3451 = vmatprep.mubr.msk.bf16.mxu0 %vm3718_vm1, %v3717_v15  ;;  %3448 = vmatpush3.bf16.msra.mxu0 %v3556_v19 }
0x1b40   :  { %v2313_v7 = vpack.c.bf16 %v2311_v27, %v2311_v27  ;;  %3449 = vmatprep.subr.bf16.mxu0 %v3717_v15 }
0x1b42   :  { %3444 = vmatmul.mubr.msk.bf16.vlgmr.msra.gmra.mrb[68].mxu1 %vm204_vm2, %v2313_v7  ;;  %v3074_v7 = vld [vmem:[%s4454_s9 + $0x1] ss:$0 sm:$0xff] }
0x1b43   :  { %3459 = vmatprep.mubr.msk.bf16.mxu1 %vm3718_vm1, %v3717_v15  ;;  %3450 = vmatpush3.bf16.msra.mxu0 %v3557_v20 }
0x1b44   :  { %3463 = vmatprep.subr.bf16.mxu0 %v3717_v15 }
0x1c11   :  { %v2356_v21 = vpop.f32.mrb[72].mxu0 }
0x1c12   :  { %v3439_v22 = vpop.f32.mrb[73].mxu0 }
0x1c13   :  { %v2359_v23 = vpop.f32.mrb[74].mxu0 }
0x1c14   :  { %v3440_v25 = vpop.f32.mrb[75].mxu0  ;;  %v3560_v23 = vld [vmem:[%s4457_s12 + $0x20] sm:$0xff]  }
0x1c15   :  { %v2404_v26 = vpop.f32.mrb[68].mxu1  ;;  %v3561_v25 = vld [vmem:[%s4457_s12 + $0x28] sm:$0xff]  }
0x1c16   :  { %v3538_v28 = vpack.i.bf16 %v2404_v26, %v2356_v21  ;;  %v3445_v29 = vpop.f32.mrb[69].mxu1  ;;  %v3562_v26 = vld [vmem:[%s4457_s12 + $0x30] sm:$0xff]  }
0x1c17   :  { %v2407_v30 = vpop.f32.mrb[70].mxu1  ;;  %v3080_v29 = vld [vmem:[%s4456_s11 + $0x1] ss:$0 sm:$0xff] }
0x1c18   :  { %v3446_v33 = vpop.f32.mrb[71].mxu1  ;;  %3539 = vrot.lane.b32.xlu1 %v3538_v28, %s4505_s25  ;;  %v3563_v28 = vld [vmem:[%s4457_s12 + $0x38] sm:$0xff]  }
0x1c8a   :  { %v3540_v42 = vpop.permute.xlu1 %3539 }
0x1c8b   :  { %v3542_v41 = vunpack.i.h.bf16 %v3540_v42  ;;  %v3541_v12 = vunpack.i.l.bf16 %v3540_v42 }
0x1c8d   :  { %v2439_v44 = vsel %vm1118_vm5, %v2437_v18, %v3542_v41  ;;  %v2438_v45 = vsel %vm1118_vm5, %v2436_v17, %v3541_v12 }
0x1c8e   :  { %v2445_v46 = vpack.c.bf16 %v2439_v44, %v2438_v45 }
0x1c90   :  { %3452 = vmatmul.mubr.msk.bf16.vlgmr.msra.gmra.mrb[76].mxu0 %vm87_vm0, %v2445_v46 }
0x1c91   :  { %3471 = vmatprep.mubr.msk.bf16.mxu0 %vm3718_vm1, %v3717_v15  ;;  %3464 = vmatpush3.bf16.msra.mxu0 %v3560_v23  ;;  %v3102_v23 = vld [vmem:[%s4460_s15 + $0x1] ss:$0 sm:$0xff] }
0x1c92   :  { %3465 = vmatprep.subr.bf16.mxu0 %v3717_v15 }
0x1c95   :  { %3466 = vmatpush3.bf16.msra.mxu0 %v3561_v25 }
0x1c96   :  { %3467 = vmatprep.subr.bf16.mxu0 %v3717_v15 }
0x1c99   :  { %3468 = vmatpush3.bf16.msra.mxu0 %v3562_v26 }
0x1c9a   :  { %3469 = vmatprep.subr.bf16.mxu0 %v3717_v15 }
0x1c9d   :  { %3470 = vmatpush3.bf16.msra.mxu0 %v3563_v28 }
0x1d63   :  { %v2503_v56 = vpop.f32.mrb[76].mxu0 }
0x1d64   :  { %v2504_v49 = vadd.f32 %v3067_v53, %v2503_v56  ;;  %v3453_v50 = vpop.f32.mrb[77].mxu0 }
0x1d65   :  { %v2506_v51 = vpop.f32.mrb[78].mxu0 }
0x1d66   :  { %v2507_v39 = vadd.f32 %v3067_v53, %v2506_v51  ;;  %v3454_v52 = vpop.f32.mrb[79].mxu0  ;;  %v2510_v54 = vadd.f32 %v2504_v49, %v4141_v60 }
0x1d68   :  { %v2516_v55 = vsel %vm87_vm0, %v2510_v54, 0.0  ;;  %v2511_v57 = vadd.f32 %v2507_v39, %v4143_v61  ;;  %v3558_v61 = vld [vmem:[%s4455_s10 + $0x10] sm:$0xff]  }
0x1d69   :  { %2517 = vadd.xlane.f32.xlu0 %v2516_v55  ;;  %3456 = vmatpush3.bf16.msra.mxu1 %v3558_v61 }
0x1d6a   :  { %v2519_v58 = vsel %vm87_vm0, %v2511_v57, 0.0  ;;  %3457 = vmatprep.subr.bf16.mxu1 %v3717_v15 }
0x1d6b   :  { %2520 = vadd.xlane.f32.xlu1 %v2519_v58 }
0x1d6d   :  { %3458 = vmatpush3.bf16.msra.mxu1 %v3559_v4 }
0x1d6e   :  { %3475 = vmatprep.subr.bf16.mxu1 %v3717_v15 }
0x1df6   :  { %v2518_v59 = vpop.xlane.xlu0 %2517 }
0x1df7   :  { %v2522_v62 = vmul.f32 0.03125, %v2518_v59 }
0x1df8   :  { %v2521_v63 = vpop.xlane.xlu1 %2520 }
0x1df9   :  { %v2524_v0 = vsub.f32 %v2510_v54, %v2522_v62  ;;  %v2523_v1 = vmul.f32 0.03125, %v2521_v63  ;;  %v3093_v54 = vld [vmem:[%s4458_s13 + $0x1] ss:$0 sm:$0xff] }
0x1dfb   :  { %v2525_v2 = vsub.f32 %v2511_v57, %v2523_v1  ;;  %v2526_v3 = vmul.f32 %v2524_v0, %v2524_v0 }
0x1dfd   :  { %v2528_v5 = vsel %vm87_vm0, %v2526_v3, 0.0  ;;  %v2527_v6 = vmul.f32 %v2525_v2, %v2525_v2 }
0x1dfe   :  { %2529 = vadd.xlane.f32.xlu0 %v2528_v5 }
0x1dff   :  { %v2531_v60 = vsel %vm87_vm0, %v2527_v6, 0.0 }
0x1e02   :  { %2532 = vadd.xlane.f32.xlu0 %v2531_v60 }
0x1e8b   :  { %v2530_v43 = vpop.xlane.xlu0 %2529 }
0x1e8c   :  { %v2534_v47 = vmul.f32 0.03125, %v2530_v43 }
0x1e8e   :  { %v2536_v48 = vadd.f32 1e-12, %v2534_v47 }
0x1e8f   :  { %v2533_v8 = vpop.xlane.xlu0 %2532 }
0x1e90   :  { %3648 = vrsqrt.f32 %v2536_v48  ;;  %v2535_v9 = vmul.f32 0.03125, %v2533_v8 }
0x1e92   :  { %v2537_v10 = vadd.f32 1e-12, %v2535_v9 }
0x1e94   :  { %3650 = vrsqrt.f32 %v2537_v10  ;;  %v3564_v10 = vld [vmem:[%s4461_s16] sm:$0xff]  }
0x1e9a   :  { %v3649_v11 = vpop.eup %3648 }
0x1e9b   :  { %v2540_v13 = vmul.f32 %v3649_v11, %v2524_v0  ;;  %v3565_v11 = vld [vmem:[%s4461_s16 + $0x8] sm:$0xff]  }
0x1e9d   :  { %v2548_v24 = vmul.f32 %v3073_v14, %v2540_v13 }
0x1e9e   :  { %v3651_v16 = vpop.eup %3650 }
0x1e9f   :  { %v2541_v27 = vmul.f32 %v3651_v16, %v2525_v2  ;;  %v2556_v20 = vadd.f32 %v3074_v7, %v2548_v24 }
0x1ea1   :  { %v2549_v19 = vmul.f32 %v3073_v14, %v2541_v27 }
0x1ea3   :  { %v2557_v21 = vadd.f32 %v3074_v7, %v2549_v19 }
0x1ea5   :  { %v2563_v22 = vpack.c.bf16 %v2557_v21, %v2556_v20 }
0x1ea7   :  { %3460 = vmatmul.mubr.msk.bf16.vlgmr.msra.gmra.mrb[72].mxu1 %vm87_vm0, %v2563_v22 }
0x1ea8   :  { %3479 = vmatprep.mubr.msk.bf16.mxu1 %vm3718_vm1, %v3717_v15  ;;  %3476 = vmatpush3.bf16.msra.mxu1 %v3564_v10 }
0x1ea9   :  { %3477 = vmatprep.subr.bf16.mxu1 %v3717_v15 }
0x1eac   :  { %3478 = vmatpush3.bf16.msra.mxu1 %v3565_v11 }
0x1ead   :  { %3483 = vmatprep.subr.bf16.mxu1 %v3717_v15 }
0x1f7a   :  { %v2621_v30 = vpop.f32.mrb[72].mxu1 }
0x1f7b   :  { %v2622_v33 = vadd.f32 %v3080_v29, %v2621_v30  ;;  %v3461_v34 = vpop.f32.mrb[73].mxu1 }
0x1f7c   :  { %v2624_v35 = vpop.f32.mrb[74].mxu1 }
0x1f7d   :  { %v2630_v36 = vmul.f32 0.044715, %v2622_v33  ;;  %v2625_v37 = vadd.f32 %v3080_v29, %v2624_v35  ;;  %v3462_v38 = vpop.f32.mrb[75].mxu1  ;;  %v2628_v56 = vmul.f32 0.5, %v2622_v33 }
0x1f7f   :  { %v2632_v40 = vmul.f32 %v2630_v36, %v2622_v33  ;;  %v2631_v42 = vmul.f32 0.044715, %v2625_v37  ;;  %v2629_v49 = vmul.f32 0.5, %v2625_v37 }
0x1f81   :  { %v2634_v31 = vmul.f32 %v2632_v40, %v2622_v33  ;;  %v2633_v32 = vmul.f32 %v2631_v42, %v2625_v37  ;;  %v3566_v42 = vld [vmem:[%s4463_s18] sm:$0xff]  }
0x1f83   :  { %v2636_v41 = vadd.f32 %v2634_v31, %v2622_v33  ;;  %v2635_v12 = vmul.f32 %v2633_v32, %v2625_v37  ;;  %v3567_v31 = vld [vmem:[%s4463_s18 + $0x8] sm:$0xff]   ;;  %v3103_v32 = vld [vmem:[%s4462_s17] ss:$0 sm:$0xff]  ;;  %s2938_s17 = sld [smem:[#allocation2]]  ;;  %s3111_s18 = sld [smem:[#allocation2 + $0x1]] }
0x1f85   :  { %v2638_v17 = vmul.f32 0.7978846, %v2636_v41  ;;  %v2637_v18 = vadd.f32 %v2635_v12, %v2625_v37 }
0x1f87   :  { %3652 = vtanh.f32 %v2638_v17  ;;  %v2639_v44 = vmul.f32 0.7978846, %v2637_v18 }
0x1f89   :  { %3654 = vtanh.f32 %v2639_v44 }
0x1f91   :  { %v3653_v45 = vpop.eup %3652 }
0x1f92   :  { %v2642_v46 = vadd.f32 1.0, %v3653_v45 }
0x1f93   :  { %v3655_v53 = vpop.eup %3654 }
0x1f94   :  { %v2643_v50 = vadd.f32 1.0, %v3655_v53  ;;  %v2644_v51 = vmul.f32 %v2642_v46, %v2628_v56  ;;  %v3107_v53 = vld [vmem:[%s4464_s19] ss:$0 sm:$0xff]  ;;  %s3734_s19 = smov [#allocation6]  }
0x1f95   :  { %s2975_s8 = sshll.u32 %s3734_s19, 4  ;;  %s2976_s8 = int_to_ptr.vmem [resolvable:$true] %s2975_s8 }
0x1f96   :  { %v2645_v39 = vmul.f32 %v2643_v50, %v2629_v49  ;;  %s3678_s0 = scalar_lea.vmem %s2976_s8, 32  ;;  %p3683_p6 = scmp.lt.s32.totalorder %s2976_s8, %s2976_s8 }
0x1f97   :  { %p3679_p5 = scmp.ne.s32.totalorder %s2976_s8, %s3678_s0  ;;  %p3684_p7 = scmp.lt.s32.totalorder %s3678_s0, %s3678_s0 }
0x1f98   :  { %v2655_v52 = vpack.c.bf16 %v2645_v39, %v2644_v51 }
0x1f99   :  { %p3685_p8 = por %p3684_p7, %p3683_p6 }
0x1f9a   :  { %3472 = vmatmul.mubr.msk.bf16.vlgmr.msra.gmra.mrb[80].mxu0 %vm1361_vm6, %v2655_v52 }
0x1f9b   :  { %p3686_p9 = pnand %p3685_p8, %p3679_p5 }
0x206d   :  { %v2725_v55 = vpop.f32.mrb[80].mxu0 }
0x206e   :  { %v2726_v57 = vadd.f32 %v3093_v54, %v2725_v55  ;;  %v3473_v58 = vpop.f32.mrb[81].mxu0  ;;  %v2939_v55 = vstv %s2938_s17 }
0x206f   :  { %v2728_v59 = vpop.f32.mrb[82].mxu0 }
0x2070   :  { %v2732_v62 = vadd.f32 %v2726_v57, %v2556_v20  ;;  %v2729_v63 = vadd.f32 %v3093_v54, %v2728_v59  ;;  %v3474_v0 = vpop.f32.mrb[83].mxu0  ;;  %v3101_v20 = vld [vmem:[%s4459_s14 + $0x1] ss:$0 sm:$0xff]  ;;  %v3733_v54 = vmov 0   ;;  %v2941_v57 = vstv %s3111_s18 }
0x2071   :  { %3543 = vset.pattern.permute.xlu0 %v3733_v54  ;;  %v2943_v58 = vsel %vm2942_vm9, %v2939_v55, %v2941_v57 }
0x2072   :  { %v2733_v1 = vadd.f32 %v2729_v63, %v2557_v21  ;;  %v2738_v2 = vsel %vm87_vm0, %v2732_v62, 0.0 }
0x2073   :  { %2739 = vadd.xlane.f32.xlu1 %v2738_v2 }
0x2074   :  { %v2741_v3 = vsel %vm87_vm0, %v2733_v1, 0.0 }
0x2075   :  { %2742 = vadd.xlane.f32.xlu0 %v2741_v3  ;;  %v2944_v3 = vlaneseq }
0x2100   :  { %v2740_v5 = vpop.xlane.xlu1 %2739 }
0x2101   :  { %v2744_v6 = vmul.f32 0.03125, %v2740_v5  ;;  %v2945_v5 = vand.u32 127, %v2944_v3 }
0x2102   :  { %v2743_v60 = vpop.xlane.xlu0 %2742 }
0x2103   :  { %v2746_v61 = vsub.f32 %v2732_v62, %v2744_v6  ;;  %v2745_v4 = vmul.f32 0.03125, %v2743_v60 }
0x2105   :  { %v2747_v43 = vsub.f32 %v2733_v1, %v2745_v4  ;;  %v2748_v47 = vmul.f32 %v2746_v61, %v2746_v61 }
0x2107   :  { %v2750_v48 = vsel %vm87_vm0, %v2748_v47, 0.0  ;;  %v2749_v8 = vmul.f32 %v2747_v43, %v2747_v43 }
0x2108   :  { %2751 = vadd.xlane.f32.xlu1 %v2750_v48 }
0x2109   :  { %v2753_v9 = vsel %vm87_vm0, %v2749_v8, 0.0 }
0x210a   :  { %2754 = vadd.xlane.f32.xlu0 %v2753_v9 }
0x2195   :  { %v2752_v13 = vpop.xlane.xlu1 %2751 }
0x2196   :  { %v2756_v14 = vmul.f32 0.03125, %v2752_v13 }
0x2197   :  { %v2755_v16 = vpop.xlane.xlu0 %2754 }
0x2198   :  { %v2758_v24 = vadd.f32 1e-12, %v2756_v14  ;;  %v2757_v27 = vmul.f32 0.03125, %v2755_v16 }
0x219a   :  { %3656 = vrsqrt.f32 %v2758_v24  ;;  %v2759_v7 = vadd.f32 1e-12, %v2757_v27 }
0x219c   :  { %3658 = vrsqrt.f32 %v2759_v7 }
0x21a4   :  { %v3657_v19 = vpop.eup %3656 }
0x21a5   :  { %v2762_v21 = vmul.f32 %v3657_v19, %v2746_v61 }
0x21a6   :  { %v3659_v22 = vpop.eup %3658 }
0x21a7   :  { %v2770_v25 = vmul.f32 %v3101_v20, %v2762_v21  ;;  %v2763_v26 = vmul.f32 %v3659_v22, %v2747_v43 }
0x21a9   :  { %v2778_v28 = vadd.f32 %v3102_v23, %v2770_v25  ;;  %v2771_v29 = vmul.f32 %v3101_v20, %v2763_v26 }
0x21ab   :  { %v2779_v30 = vadd.f32 %v3102_v23, %v2771_v29  ;;  %v2784_v33 = vpack.c.bf16 %v2778_v28, %v2778_v28 }
0x21ad   :  { %v2785_v34 = vpack.c.bf16 %v2779_v30, %v2779_v30  ;;  %v2795_v36 = vunpack.c.l.b16 %v2784_v33 }
0x21af   :  { %v2796_v35 = vunpack.c.l.b16 %v2785_v34 }
0x21b1   :  { %v2797_v37 = vrot.slane %v2796_v35, 7 }
0x21b3   :  { %v2799_v38 = vsel %vm2798_vm7, %v2797_v37, %v2795_v36 }
0x21b4   :  { %v2800_v40 = vpack.c.b16 %v2799_v38, %v2799_v38 }
0x21b6   :  { %3480 = vmatmul.mubr.msk.bf16.vlgmr.msra.gmra.mrb[76].mxu1 %vm87_vm0, %v2800_v40 }
0x21b7   :  { %3487 = vmatprep.mubr.msk.bf16.mxu1 %vm3718_vm1, %v3717_v15  ;;  %3484 = vmatpush3.bf16.msra.mxu1 %v3566_v42 }
0x21b8   :  { %3485 = vmatprep.subr.bf16.mxu1 %v3717_v15 }
0x21bb   :  { %3486 = vmatpush3.bf16.msra.mxu1 %v3567_v31 }
0x2289   :  { %v2850_v41 = vpop.f32.mrb[76].mxu1 }
0x228a   :  { %v2851_v12 = vadd.f32 %v3103_v32, %v2850_v41  ;;  %v3481_v17 = vpop.f32.mrb[77].mxu1 }
0x228b   :  { %v2853_v18 = vpop.f32.mrb[78].mxu1 }
0x228c   :  { %3660 = vtanh.f32 %v2851_v12  ;;  %v3482_v44 = vpop.f32.mrb[79].mxu1 }
0x2296   :  { %v3661_v45 = vpop.eup %3660 }
0x2297   :  { %v2861_v46 = vpack.c.bf16 %v3661_v45, %v3661_v45 }
0x2299   :  { %3488 = vmatmul.mubr.msk.bf16.vlgmr.msra.gmra.mrb[80].mxu1 %vm87_vm0, %v2861_v46 }
0x236c   :  { %v2918_v56 = vpop.f32.mrb[80].mxu1 }
0x236d   :  { %v2919_v49 = vadd.f32 %v3107_v53, %v2918_v56  ;;  %v3489_v50 = vpop.f32.mrb[81].mxu1 }
0x236e   :  { %v2921_v51 = vpop.f32.mrb[82].mxu1 }
0x236f   :  { %2924 = vst [vmem:[#allocation6] sm:$0x3] %v2919_v49  ;;  %v3490_v39 = vpop.f32.mrb[83].mxu1  ;;  %v2926_v52 = vsel %vm2925_vm8, %v2919_v49, -inf }
0x2370   :  { %2927 = vmax.xlane.f32.xlu0 %v2926_v52 }
0x2386   :  { %2947 = vperm.xlu0 %3543, %v2943_v58  }
0x23fd   :  { %v2928_v59 = vpop.xlane.xlu0 %2927 }
0x23fe   :  { %v2929_v62 = vsub.f32 %v2919_v49, %v2928_v59 }
0x2400   :  { %v2930_v63 = vmul.f32 1.442695, %v2929_v62 }
0x2402   :  { %3662 = vpow2.f32 %v2930_v63 }
0x2405   :  { %v2948_v6 = vpop.permute.xlu0 %2947 }
0x2406   :  { %vm2949_vm10 = vcmp.eq.s32.totalorder %v2945_v5, %v2948_v6 }
0x2407   :  { %v3112_v43 = vsel %vm2949_vm10, 1.0, %v3717_v15 }
0x240c   :  { %v3663_v0 = vpop.eup %3662 }
0x240d   :  { %v2932_v1 = vsel %vm2925_vm8, %v3663_v0, 0.0 }
0x240e   :  { %2933 = vadd.xlane.f32.xlu1 %v2932_v1 }
0x249b   :  { %v2934_v2 = vpop.xlane.xlu1 %2933 }
0x249c   :  { %3664 = vlog2.f32 %v2934_v2 }
0x24a6   :  { %v3665_v60 = vpop.eup %3664 }
0x24a7   :  { %v2936_v61 = vmul.f32 0.6931472, %v3665_v60 }
0x24a9   :  { %v2937_v4 = vadd.f32 %v2936_v61, %v2928_v59 }
0x24ab   :  { %v2952_v47 = vsub.f32 %v2937_v4, %v2919_v49 }
0x24ad   :  { %v2953_v48 = vmul.f32 %v3112_v43, %v2952_v47 }
0x24af   :  { %v2954_v8 = vsel %vm2925_vm8, %v2953_v48, 0.0 }
0x24b0   :  { %2955 = vadd.xlane.f32.xlu1 %v2954_v8 }
0x24b1   :  { %3689 = shalt.err (!%p3686_p9)
}
0x24b2   :  { %s3690_s27 = scalar_lea.hbm %s4465_s20, 32 }
0x24b3   :  { %p3691_p10 = scmp.ne.s32.totalorder %s4465_s20, %s3690_s27  ;;  %p3694_p11 = scmp.lt.u32.totalorder %s3690_s27, %s4465_s20 }
0x24b5   :  { %p3696_p12 = pnand %p3694_p11, %p3691_p10 }
0x24b7   :  { %3699 = shalt.err (!%p3696_p12)
}
0x24b8   :  { %2978 = dma.vmem_to_hbm [thread:$0]  %s2976_s8, 32, %s4465_s20, [#allocation3]  }
0x24b9   :  { %s3700_s30 = scalar_lea.hbm %s4466_s21, 16 }
0x24ba   :  { %p3701_p13 = scmp.ne.s32.totalorder %s4466_s21, %s3700_s30  ;;  %p3704_p0 = scmp.lt.u32.totalorder %s3700_s30, %s4466_s21 }
0x24bc   :  { %p3706_p1 = pnand %p3704_p0, %p3701_p13 }
0x253d   :  { %v2956_v15 = vpop.xlane.xlu1 %2955 }
0x253e   :  { %v2957_v9 = vrot.slane %v2956_v15, 4 }
0x2540   :  { %v2958_v10 = vadd.f32 %v2957_v9, %v2956_v15 }
0x2542   :  { %v2959_v11 = vrot.slane %v2958_v10, 2 }
0x2544   :  { %v2960_v13 = vadd.f32 %v2959_v11, %v2958_v10 }
0x2546   :  { %v2961_v14 = vrot.slane %v2960_v13, 1 }
0x2548   :  { %v2962_v16 = vadd.f32 %v2961_v14, %v2960_v13 }
0x254a   :  { %3491 = vpush %v2962_v16 }
0x257b   :  { %s3492_s6 = spop %3491 }
0x257c   :  { %s2966_s26 = smul.f32 0.5, %s3492_s6 }
0x257e   :  { %2968 = sst [smem:[#allocation7]] %s2966_s26 }
0x257f   :  { %3709 = shalt.err (!%p3706_p1)
}
0x2580   :  { %s3735_s15 = smov [#allocation7]  }
0x2581   :  { %2986 = dma.smem_to_hbm %s3735_s15, 16, %s4466_s21, [#allocation4]  }
0x2582   :  { %3712 = dma.done.wait [#allocation3], 32  }
0x2583   :  { %3713 = vsyncadd [#allocation3], 4294967264 }
0x2584   :  { %3714 = dma.done.wait [#allocation4], 16  }
0x2585   :  { %3715 = vsyncadd [#allocation4], 4294967280 }
0x2586   :  { %2993 = sfence }
0x2587   :  { %2994 = vsyncpa [#allocation3], 1 }
0x2588   :  { %2995 = vsyncpa [#allocation4], 1 }
0x2589   :  { %2996 = vsyncpa [#allocation5], 1 }

</bundles_post_ra>
